<compile_context>
chip_gen: v6e
topology: v6e:2x2x1
jax: 0.10.0
libtpu: 0.0.40
codegen_flags: <defaults>
</compile_context>

<pallas_src>
import functools
import math

import jax
import jax.numpy as jnp
from jax.experimental import pallas as pl
from jax.experimental.pallas import tpu as pltpu

_LANE = 128
_SUBLANE = 8

# Matmul-operand dtype.  jnp.float32 keeps parity with the f32 PyTorch reference;
# set to jnp.bfloat16 on v6e/v7x for ~3-4x MXU throughput (softmax, LayerNorm and
# all accumulations stay f32 either way).
_MATMUL_OPERAND_DTYPE = jnp.float32


# --------------------------------------------------------------------------
# Small helpers
# --------------------------------------------------------------------------

def _round_up(x, m):
    return ((x + m - 1) // m) * m


def _pad2d(a, rows, cols):
    pr, pc = rows - a.shape[0], cols - a.shape[1]
    if pr == 0 and pc == 0:
        return a
    return jnp.pad(a, ((0, pr), (0, pc)))


def _pad_axis(a, axis, new_len):
    pad = new_len - a.shape[axis]
    if pad == 0:
        return a
    widths = [(0, 0)] * a.ndim
    widths[axis] = (0, pad)
    return jnp.pad(a, widths)


def _pick_tile(dim, max_tile, unit):
    """Largest multiple of `unit` that divides `dim` (a multiple of unit), <= max_tile."""
    t = max(unit, (min(max_tile, dim) // unit) * unit)
    while dim % t:
        t -= unit
    return t


def _seq_tiles(seq_len, max_tile, unit):
    """Returns (padded_len, tile).  Full-dim blocks (len <= max_tile) skip padding."""
    if seq_len <= max_tile:
        return seq_len, seq_len
    padded = _round_up(seq_len, unit)
    return padded, _pick_tile(padded, max_tile, unit)


@functools.lru_cache(maxsize=None)
def _vmem_limit():
    """Generation-aware scoped-VMEM limit: ~half of physical, capped at 64 MiB."""
    cap = 0
    try:
        info_fn = getattr(pltpu, "get_tpu_info", None)
        if info_fn is not None:
            cap = int(info_fn().vmem_capacity_bytes)
    except Exception:
        cap = 0
    if cap <= 0:
        return 32 * 1024 * 1024            # conservative default, safe everywhere
    return int(min(64 * 1024 * 1024, cap // 2))   # v5e/v6e: 64 MiB, v7x: 32 MiB


# --------------------------------------------------------------------------
# Tiled linear kernel (bias + optional ReLU fused, acc directly in f32 output)
# --------------------------------------------------------------------------

def _matmul_kernel(x_ref, w_ref, b_ref, o_ref, *, activation):
    k = pl.program_id(2)

    @pl.when(k == 0)
    def _():
        o_ref[...] = jnp.zeros_like(o_ref)

    o_ref[...] += jnp.dot(x_ref[...].astype(_MATMUL_OPERAND_DTYPE),
                          w_ref[...].astype(_MATMUL_OPERAND_DTYPE),
                          preferred_element_type=jnp.float32)

    @pl.when(k == pl.num_programs(2) - 1)
    def _():
        y = o_ref[...] + b_ref[...]
        if activation == "relu":
            y = jnp.maximum(y, 0.0)
        o_ref[...] = y


def linear(x, w, b, n_out, activation="none", tm=256, tn=256, tk=512):
    """y = x @ w + b.

    x: [M, K] logical.  w: [Kp, Np] pre-padded (multiples of 128), b: [1, Np]
    pre-padded.  Returns [M, n_out] (padded rows/cols sliced off)."""
    M, K = x.shape
    Kp, Np = w.shape

    tm = min(tm, _round_up(M, _SUBLANE))
    Mp = _round_up(M, tm)
    tk = _pick_tile(Kp, tk, _LANE)
    tn = _pick_tile(Np, tn, _LANE)

    xp = _pad2d(x, Mp, Kp)   # activation-only padding; weights padded once at init

    out = pl.pallas_call(
        functools.partial(_matmul_kernel, activation=activation),
        out_shape=jax.ShapeDtypeStruct((Mp, Np), jnp.float32),
        grid=(Mp // tm, Np // tn, Kp // tk),
        in_specs=[
            pl.BlockSpec((tm, tk), lambda i, j, k: (i, k)),
            pl.BlockSpec((tk, tn), lambda i, j, k: (k, j)),
            pl.BlockSpec((1, tn), lambda i, j, k: (0, j)),
        ],
        out_specs=pl.BlockSpec((tm, tn), lambda i, j, k: (i, j)),
        compiler_params=pltpu.CompilerParams(
            dimension_semantics=("parallel", "parallel", "arbitrary"),
            vmem_limit_bytes=_vmem_limit()),
    )(xp, w, b)

    if Mp != M or Np != n_out:
        out = out[:M, :n_out]
    return out


# --------------------------------------------------------------------------
# Fused FFN kernel: relu(x @ w1 + b1) @ w2 + b2, hidden never leaves VMEM
# --------------------------------------------------------------------------

def _ffn_kernel(x_ref, w1_ref, b1_ref, w2_ref, b2_ref, o_ref):
    j = pl.program_id(1)

    @pl.when(j == 0)
    def _():
        o_ref[...] = jnp.zeros_like(o_ref)

    h = jnp.dot(x_ref[...].astype(_MATMUL_OPERAND_DTYPE),
                w1_ref[...].astype(_MATMUL_OPERAND_DTYPE),
                preferred_element_type=jnp.float32)
    h = jnp.maximum(h + b1_ref[...], 0.0)
    o_ref[...] += jnp.dot(h.astype(_MATMUL_OPERAND_DTYPE),
                          w2_ref[...].astype(_MATMUL_OPERAND_DTYPE),
                          preferred_element_type=jnp.float32)

    @pl.when(j == pl.num_programs(1) - 1)
    def _():
        o_ref[...] = o_ref[...] + b2_ref[...]


def feed_forward(x, p, tm=128, th=512):
    """x: [B, S, D] -> [B, S, D] through relu(x@w1+b1)@w2+b2 (weights pre-padded)."""
    B, S, D = x.shape
    M = B * S
    Dp, Hp = p["w1"].shape

    tm = min(tm, _round_up(M, _SUBLANE))
    Mp = _round_up(M, tm)
    th = _pick_tile(Hp, th, _LANE)

    xp = _pad2d(x.reshape(M, D), Mp, Dp)

    out = pl.pallas_call(
        _ffn_kernel,
        out_shape=jax.ShapeDtypeStruct((Mp, Dp), jnp.float32),
        grid=(Mp // tm, Hp // th),
        in_specs=[
            pl.BlockSpec((tm, Dp), lambda i, j: (i, 0)),
            pl.BlockSpec((Dp, th), lambda i, j: (0, j)),
            pl.BlockSpec((1, th), lambda i, j: (0, j)),
            pl.BlockSpec((th, Dp), lambda i, j: (j, 0)),
            pl.BlockSpec((1, Dp), lambda i, j: (0, 0)),
        ],
        out_specs=pl.BlockSpec((tm, Dp), lambda i, j: (i, 0)),
        compiler_params=pltpu.CompilerParams(
            dimension_semantics=("parallel", "arbitrary"),
            vmem_limit_bytes=_vmem_limit()),
    )(xp, p["w1"], p["b1"], p["w2"], p["b2"])

    if Mp != M or Dp != D:
        out = out[:M, :D]
    return out.reshape(B, S, D)


# --------------------------------------------------------------------------
# Fused residual-add + LayerNorm kernel (tiled over rows)
# --------------------------------------------------------------------------

def _ln_residual_kernel(x_ref, r_ref, g_ref, b_ref, o_ref, *, eps):
    x = x_ref[...].astype(jnp.float32) + r_ref[...].astype(jnp.float32)
    mean = jnp.mean(x, axis=-1, keepdims=True)
    var = jnp.mean(jnp.square(x - mean), axis=-1, keepdims=True)
    y = (x - mean) * jax.lax.rsqrt(var + eps)
    o_ref[...] = y * g_ref[...] + b_ref[...]


def layer_norm_residual(x, res, gamma2d, beta2d, eps=1e-5, tm=512):
    """LN(x + res) over the last axis.  x, res: [B, S, D]; gamma/beta: [1, D]."""
    B, S, D = x.shape
    M = B * S
    tm = min(tm, _round_up(M, _SUBLANE))
    Mp = _round_up(M, tm)

    xp = _pad2d(x.reshape(M, D), Mp, D)     # D is NOT padded: LN stats stay exact
    rp = _pad2d(res.reshape(M, D), Mp, D)

    out = pl.pallas_call(
        functools.partial(_ln_residual_kernel, eps=eps),
        out_shape=jax.ShapeDtypeStruct((Mp, D), jnp.float32),
        grid=(Mp // tm,),
        in_specs=[
            pl.BlockSpec((tm, D), lambda i: (i, 0)),
            pl.BlockSpec((tm, D), lambda i: (i, 0)),
            pl.BlockSpec((1, D), lambda i: (0, 0)),
            pl.BlockSpec((1, D), lambda i: (0, 0)),
        ],
        out_specs=pl.BlockSpec((tm, D), lambda i: (i, 0)),
        compiler_params=pltpu.CompilerParams(
            dimension_semantics=("parallel",),
            vmem_limit_bytes=_vmem_limit()),
    )(xp, rp, gamma2d, beta2d)

    if Mp != M:
        out = out[:M]
    return out.reshape(B, S, D)


# --------------------------------------------------------------------------
# Flash-style attention: grid=(B, Sq_tiles, Sk_tiles), heads batched in one dot
# --------------------------------------------------------------------------

def _flash_attn_kernel(q_ref, k_ref, v_ref, m_ref, o_ref,
                       m_sc, l_sc, acc_sc, *, scale, mask_value):
    ki = pl.program_id(2)

    @pl.when(ki == 0)
    def _():
        m_sc[...] = jnp.full(m_sc.shape, -jnp.inf, jnp.float32)
        l_sc[...] = jnp.zeros(l_sc.shape, jnp.float32)
        acc_sc[...] = jnp.zeros(acc_sc.shape, jnp.float32)

    q = q_ref[...].astype(_MATMUL_OPERAND_DTYPE)     # (H, tq, dh)
    k = k_ref[...].astype(_MATMUL_OPERAND_DTYPE)     # (H, tk, dh)
    v = v_ref[...]                                   # (H, tk, dh)
    mask = m_ref[...]                                # (1, tk), 1.0 = valid

    # all heads in one batched contraction (MXU-friendly vs per-head dh-wide dots)
    s = jnp.einsum("hqd,hkd->hqk", q, k,
                   preferred_element_type=jnp.float32) * scale     # (H, tq, tk)
    s = jnp.where(mask[None, :, :] > 0.5, s, mask_value)

    m_prev = m_sc[...]
    m_new = jnp.maximum(m_prev, jnp.max(s, axis=-1, keepdims=True))
    alpha = jnp.exp(m_prev - m_new)
    p = jnp.exp(s - m_new)
    l_sc[...] = alpha * l_sc[...] + jnp.sum(p, axis=-1, keepdims=True)
    acc_sc[...] = alpha * acc_sc[...] + jnp.einsum(
        "hqk,hkd->hqd", p.astype(_MATMUL_OPERAND_DTYPE),
        v.astype(_MATMUL_OPERAND_DTYPE), preferred_element_type=jnp.float32)
    m_sc[...] = m_new

    @pl.when(ki == pl.num_programs(2) - 1)
    def _():
        o_ref[...] = (acc_sc[...] *
                      pl.reciprocal(l_sc[...], approx=True)).astype(o_ref.dtype)


def flash_attention(q, k, v, mask, tq_max=256, tk_max=256):
    """q: [B, H, Sq, dh], k/v: [B, H, Sk, dh], mask: [B, Sk] -> [B, H, Sq, dh]."""
    B, H, Sq, dh = q.shape
    Sk = k.shape[2]
    scale = 1.0 / math.sqrt(dh)

    Sqp, tq = _seq_tiles(Sq, tq_max, _SUBLANE)
    Skp, tk = _seq_tiles(Sk, tk_max, _LANE)

    q = _pad_axis(q, 2, Sqp)
    k = _pad_axis(k, 2, Skp)
    v = _pad_axis(v, 2, Skp)
    mask3 = _pad_axis(mask, 1, Skp).reshape(B, 1, Skp)   # padded keys are invalid

    out = pl.pallas_call(
        functools.partial(_flash_attn_kernel, scale=scale, mask_value=-1e9),
        out_shape=jax.ShapeDtypeStruct((B, H, Sqp, dh), jnp.float32),
        grid=(B, Sqp // tq, Skp // tk),
        in_specs=[
            pl.BlockSpec((None, H, tq, dh), lambda b, qi, ki: (b, 0, qi, 0)),
            pl.BlockSpec((None, H, tk, dh), lambda b, qi, ki: (b, 0, ki, 0)),
            pl.BlockSpec((None, H, tk, dh), lambda b, qi, ki: (b, 0, ki, 0)),
            pl.BlockSpec((None, 1, tk), lambda b, qi, ki: (b, 0, ki)),
        ],
        out_specs=pl.BlockSpec((None, H, tq, dh), lambda b, qi, ki: (b, 0, qi, 0)),
        scratch_shapes=[
            pltpu.VMEM((H, tq, 1), jnp.float32),    # running max
            pltpu.VMEM((H, tq, 1), jnp.float32),    # running denom
            pltpu.VMEM((H, tq, dh), jnp.float32),   # running numerator
        ],
        compiler_params=pltpu.CompilerParams(
            dimension_semantics=("parallel", "parallel", "arbitrary"),
            vmem_limit_bytes=_vmem_limit()),
    )(q, k, v, mask3)

    if Sqp != Sq:
        out = out[:, :, :Sq, :]
    return out


# --------------------------------------------------------------------------
# Model glue (plain JAX around the Pallas kernels)
# --------------------------------------------------------------------------

def multi_head_attention(x_q, x_kv, kv_mask, p, num_heads, self_attention):
    """x_q: [B, Sq, D], x_kv: [B, Sk, D], kv_mask: [B, Sk] float -> [B, Sq, D]."""
    B, Sq, D = x_q.shape
    Sk = x_kv.shape[1]
    dh = D // num_heads

    if self_attention:
        # one fused QKV matmul; head split done with a single reshape/transpose
        qkv = linear(x_q.reshape(B * Sq, D), p["w_qkv"], p["b_qkv"], 3 * D)
        qkv = jnp.transpose(qkv.reshape(B, Sq, 3, num_heads, dh), (2, 0, 3, 1, 4))
        q, k, v = qkv[0], qkv[1], qkv[2]                      # [B, H, S, dh]
    else:
        q = linear(x_q.reshape(B * Sq, D), p["w_q"], p["b_q"], D)
        q = jnp.transpose(q.reshape(B, Sq, num_heads, dh), (0, 2, 1, 3))
        kv = linear(x_kv.reshape(B * Sk, D), p["w_kv"], p["b_kv"], 2 * D)
        kv = jnp.transpose(kv.reshape(B, Sk, 2, num_heads, dh), (2, 0, 3, 1, 4))
        k, v = kv[0], kv[1]

    o = flash_attention(q, k, v, kv_mask.astype(jnp.float32))  # [B, H, Sq, dh]
    o = jnp.transpose(o, (0, 2, 1, 3)).reshape(B * Sq, D)
    return linear(o, p["wo"], p["bo"], D).reshape(B, Sq, D)


def encoder_layer(x, src_mask, p, num_heads):
    a = multi_head_attention(x, x, src_mask, p["self_attn"], num_heads, True)
    x = layer_norm_residual(x, a, p["ln1_g"], p["ln1_b"])
    f = feed_forward(x, p["ffn"])
    x = layer_norm_residual(x, f, p["ln2_g"], p["ln2_b"])
    return x


def decoder_layer(x, enc_out, tgt_mask, src_mask, p, num_heads):
    a = multi_head_attention(x, x, tgt_mask, p["self_attn"], num_heads, True)
    x = layer_norm_residual(x, a, p["ln1_g"], p["ln1_b"])
    c = multi_head_attention(x, enc_out, src_mask, p["cross_attn"], num_heads, False)
    x = layer_norm_residual(x, c, p["ln2_g"], p["ln2_b"])
    f = feed_forward(x, p["ffn"])
    x = layer_norm_residual(x, f, p["ln3_g"], p["ln3_b"])
    return x


def sinusoidal_pos_encoding(max_len, d):
    pos = jnp.arange(max_len)[:, None].astype(jnp.float32)
    i = jnp.arange(0, d, 2).astype(jnp.float32)
    div = jnp.exp(-i * (math.log(10000.0) / d))
    pe = jnp.zeros((max_len, d), jnp.float32)
    pe = pe.at[:, 0::2].set(jnp.sin(pos * div))
    pe = pe.at[:, 1::2].set(jnp.cos(pos * div))
    return pe


@functools.partial(jax.jit,
                   static_argnames=("num_heads", "num_layers", "vocab_size"))
def transformer_forward(params, src, tgt, *, num_heads, num_layers, vocab_size):
    # padding_mask: (seq != 0)
    src_mask = (src != 0).astype(jnp.float32)   # [B, Ss]
    tgt_mask = (tgt != 0).astype(jnp.float32)   # [B, St]

    emb = params["embedding"]
    src_embeds = jnp.take(emb, src, axis=0)     # [B, Ss, D]
    tgt_embeds = jnp.take(emb, tgt, axis=0)     # [B, St, D]

    # Mirrors the PyTorch forward: positional encodings are computed but the
    # encoder/decoder receive the raw embeddings (dead code, DCE'd under jit).
    pe = params["pos_enc"]
    _src_encodings = src_embeds + pe[None, : src.shape[1], :]
    _tgt_encodings = tgt_embeds + pe[None, : tgt.shape[1], :]

    x = src_embeds
    for l in range(num_layers):
        x = encoder_layer(x, src_mask, params["encoder"][l], num_heads)
    encoder_out = x

    y = tgt_embeds
    for l in range(num_layers):
        y = decoder_layer(y, encoder_out, tgt_mask, src_mask,
                          params["decoder"][l], num_heads)

    B, St, D = y.shape
    out = linear(y.reshape(B * St, D), params["out_w"], params["out_b"],
                 vocab_size)
    return out.reshape(B, St, vocab_size)


# --------------------------------------------------------------------------
# Parameter initialization + one-time padding (outside jit)
# --------------------------------------------------------------------------

def init_params(key, vocab_size, embed_dims, num_heads, num_layers, max_seq_length):
    ffn_dim = 4 * embed_dims
    keys = list(jax.random.split(key, 4 + num_layers * 64))
    kit = iter(keys)

    def dense(shape):
        return 0.02 * jax.random.normal(next(kit), shape, jnp.float32)

    def attn_params():
        return {
            "w_qkv": dense((embed_dims, 3 * embed_dims)),
            "b_qkv": jnp.zeros((3 * embed_dims,), jnp.float32),
            "wo": dense((embed_dims, embed_dims)),
            "bo": jnp.zeros((embed_dims,), jnp.float32),
        }

    def ffn_params():
        return {
            "w1": dense((embed_dims, ffn_dim)), "b1": jnp.zeros((ffn_dim,), jnp.float32),
            "w2": dense((ffn_dim, embed_dims)), "b2": jnp.zeros((embed_dims,), jnp.float32),
        }

    def ln():
        return jnp.ones((embed_dims,), jnp.float32), jnp.zeros((embed_dims,), jnp.float32)

    def enc_layer():
        g1, b1 = ln(); g2, b2 = ln()
        return {"self_attn": attn_params(), "ffn": ffn_params(),
                "ln1_g": g1, "ln1_b": b1, "ln2_g": g2, "ln2_b": b2}

    def dec_layer():
        g1, b1 = ln(); g2, b2 = ln(); g3, b3 = ln()
        return {"self_attn": attn_params(), "cross_attn": attn_params(),
                "ffn": ffn_params(),
                "ln1_g": g1, "ln1_b": b1, "ln2_g": g2, "ln2_b": b2,
                "ln3_g": g3, "ln3_b": b3}

    return {
        "embedding": dense((vocab_size, embed_dims)),
        "pos_enc": sinusoidal_pos_encoding(max_seq_length, embed_dims),
        "encoder": [enc_layer() for _ in range(num_layers)],
        "decoder": [dec_layer() for _ in range(num_layers)],
        "out_w": dense((embed_dims, vocab_size)),
        "out_b": jnp.zeros((vocab_size,), jnp.float32),
    }


def prepare_params(params):
    """One-time weight padding to lane multiples (hoisted out of the jitted forward)."""
    D = params["embedding"].shape[1]

    def pad_w(w):
        return _pad2d(w, _round_up(w.shape[0], _LANE), _round_up(w.shape[1], _LANE))

    def pad_b(b):
        return _pad2d(b.reshape(1, -1), 1, _round_up(b.shape[0], _LANE))

    def attn(p, split):
        out = {"wo": pad_w(p["wo"]), "bo": pad_b(p["bo"])}
        if split:   # cross-attention: Q from decoder stream, packed K/V from encoder
            out["w_q"] = pad_w(p["w_qkv"][:, :D])
            out["b_q"] = pad_b(p["b_qkv"][:D])
            out["w_kv"] = pad_w(p["w_qkv"][:, D:])
            out["b_kv"] = pad_b(p["b_qkv"][D:])
        else:       # self-attention: single packed QKV projection
            out["w_qkv"] = pad_w(p["w_qkv"])
            out["b_qkv"] = pad_b(p["b_qkv"])
        return out

    def ffn(p):
        return {"w1": pad_w(p["w1"]), "b1": pad_b(p["b1"]),
                "w2": pad_w(p["w2"]), "b2": pad_b(p["b2"])}

    def enc(p):
        return {"self_attn": attn(p["self_attn"], False), "ffn": ffn(p["ffn"]),
                "ln1_g": p["ln1_g"].reshape(1, -1), "ln1_b": p["ln1_b"].reshape(1, -1),
                "ln2_g": p["ln2_g"].reshape(1, -1), "ln2_b": p["ln2_b"].reshape(1, -1)}

    def dec(p):
        return {"self_attn": attn(p["self_attn"], False),
                "cross_attn": attn(p["cross_attn"], True),
                "ffn": ffn(p["ffn"]),
                "ln1_g": p["ln1_g"].reshape(1, -1), "ln1_b": p["ln1_b"].reshape(1, -1),
                "ln2_g": p["ln2_g"].reshape(1, -1), "ln2_b": p["ln2_b"].reshape(1, -1),
                "ln3_g": p["ln3_g"].reshape(1, -1), "ln3_b": p["ln3_b"].reshape(1, -1)}

    return {
        "embedding": params["embedding"],
        "pos_enc": params["pos_enc"],
        "encoder": [enc(p) for p in params["encoder"]],
        "decoder": [dec(p) for p in params["decoder"]],
        "out_w": pad_w(params["out_w"]),
        "out_b": pad_b(params["out_b"]),
    }


# --------------------------------------------------------------------------
# Main
# --------------------------------------------------------------------------

if __name__ == "__main__":
    vocab_size = 16
    embed_dims = 32
    num_heads = 4
    num_layers = 2
    max_seq_length = 8
    batch = 2
    seq = 8

    key = jax.random.PRNGKey(0)
    k_param, k_src, k_tgt = jax.random.split(key, 3)

    params = init_params(k_param, vocab_size, embed_dims, num_heads,
                         num_layers, max_seq_length)
    padded_params = prepare_params(params)   # one-time weight padding, outside jit

    src = jax.random.randint(k_src, (batch, seq), 1, vocab_size, dtype=jnp.int32)
    tgt = jax.random.randint(k_tgt, (batch, seq), 1, vocab_size, dtype=jnp.int32)
    # introduce some padding (token id 0) to exercise the padding masks
    src = src.at[0, -2:].set(0)
    tgt = tgt.at[1, -3:].set(0)

    out = transformer_forward(padded_params, src, tgt,
                              num_heads=num_heads, num_layers=num_layers,
                              vocab_size=vocab_size)
    out = jax.block_until_ready(out)

    assert out.shape == (batch, seq, vocab_size)
    assert bool(jnp.all(jnp.isfinite(out)))
    print("KERNEL_OK")
</pallas_src>

<mosaic_0001>
module attributes {stable_mosaic.version = 11 : i64} {
  func.func @_matmul_kernel(%arg0: i32, %arg1: i32, %arg2: i32, %arg3: memref<16x128xf32, #tpu.memory_space<vmem>>, %arg4: memref<128x128xf32, #tpu.memory_space<vmem>>, %arg5: memref<1x128xf32, #tpu.memory_space<vmem>>, %arg6: memref<16x128xf32, #tpu.memory_space<vmem>>) attributes {dimension_semantics = [#tpu.dimension_semantics<parallel>, #tpu.dimension_semantics<parallel>, #tpu.dimension_semantics<arbitrary>], iteration_bounds = array<i64: 1, 1, 1>, scalar_prefetch = 0 : i64, scratch_operands = 0 : i64, tpu.core_type = #tpu.core_type<tc>, window_params = [{transform_indices = @transform_0, window_bounds = array<i64: 16, 128>}, {transform_indices = @transform_1, window_bounds = array<i64: 128, 128>}, {transform_indices = @transform_2, window_bounds = array<i64: 1, 128>}, {transform_indices = @transform_3, window_bounds = array<i64: 16, 128>}]} {
    %c0_i32 = arith.constant 0 : i32
    %0 = arith.cmpi eq, %arg2, %c0_i32 : i32
    %1 = arith.extui %0 : i1 to i32
    %c0_i32_0 = arith.constant 0 : i32
    %2 = arith.cmpi ne, %1, %c0_i32_0 : i32
    scf.if %2 {
      %cst_10 = arith.constant 0.000000e+00 : f32
      %12 = vector.broadcast %cst_10 : f32 to vector<16x128xf32>
      %c0_11 = arith.constant 0 : index
      %c0_12 = arith.constant 0 : index
      %13 = vector.load %arg6[%c0_11, %c0_12] : memref<16x128xf32, #tpu.memory_space<vmem>>, vector<16x128xf32>
      tpu.vector_store %arg6[%c0_11, %c0_12], %12 {strides = array<i32>} : memref<16x128xf32, #tpu.memory_space<vmem>>, vector<16x128xf32>,
    } else {
    }
    %c0 = arith.constant 0 : index
    %c0_1 = arith.constant 0 : index
    %3 = vector.load %arg6[%c0, %c0_1] : memref<16x128xf32, #tpu.memory_space<vmem>>, vector<16x128xf32>
    %c0_2 = arith.constant 0 : index
    %c0_3 = arith.constant 0 : index
    %4 = vector.load %arg3[%c0_2, %c0_3] : memref<16x128xf32, #tpu.memory_space<vmem>>, vector<16x128xf32>
    %c0_4 = arith.constant 0 : index
    %c0_5 = arith.constant 0 : index
    %5 = vector.load %arg4[%c0_4, %c0_5] : memref<128x128xf32, #tpu.memory_space<vmem>>, vector<128x128xf32>
    %cst = arith.constant dense<0.000000e+00> : vector<16x128xf32>
    %6 = tpu.matmul %4, %5, %cst {dimension_numbers = #tpu.dot_dimension_numbers<[1], [0], [0], [1], [0, 0, 1, 1], [], []>} : vector<16x128xf32>, vector<128x128xf32>, vector<16x128xf32> -> vector<16x128xf32>
    %7 = arith.addf %3, %6 : vector<16x128xf32>
    %c0_6 = arith.constant 0 : index
    %c0_7 = arith.constant 0 : index
    %8 = vector.load %arg6[%c0_6, %c0_7] : memref<16x128xf32, #tpu.memory_space<vmem>>, vector<16x128xf32>
    tpu.vector_store %arg6[%c0_6, %c0_7], %7 {strides = array<i32>} : memref<16x128xf32, #tpu.memory_space<vmem>>, vector<16x128xf32>,
    %c0_i32_8 = arith.constant 0 : i32
    %9 = arith.cmpi eq, %arg2, %c0_i32_8 : i32
    %10 = arith.extui %9 : i1 to i32
    %c0_i32_9 = arith.constant 0 : i32
    %11 = arith.cmpi ne, %10, %c0_i32_9 : i32
    scf.if %11 {
      %c0_10 = arith.constant 0 : index
      %c0_11 = arith.constant 0 : index
      %12 = vector.load %arg6[%c0_10, %c0_11] : memref<16x128xf32, #tpu.memory_space<vmem>>, vector<16x128xf32>
      %c0_12 = arith.constant 0 : index
      %c0_13 = arith.constant 0 : index
      %13 = vector.load %arg5[%c0_12, %c0_13] : memref<1x128xf32, #tpu.memory_space<vmem>>, vector<1x128xf32>
      %14 = vector.broadcast %13 : vector<1x128xf32> to vector<16x128xf32>
      %15 = arith.addf %12, %14 : vector<16x128xf32>
      %c0_14 = arith.constant 0 : index
      %c0_15 = arith.constant 0 : index
      %16 = vector.load %arg6[%c0_14, %c0_15] : memref<16x128xf32, #tpu.memory_space<vmem>>, vector<16x128xf32>
      tpu.vector_store %arg6[%c0_14, %c0_15], %15 {strides = array<i32>} : memref<16x128xf32, #tpu.memory_space<vmem>>, vector<16x128xf32>,
    } else {
    }
    return
  }
  func.func @transform_0(%arg0: i32, %arg1: i32, %arg2: i32) -> (i32, i32) {
    %c0_i32 = arith.constant 0 : i32
    return %arg0, %arg2 : i32, i32
  }
  func.func @transform_1(%arg0: i32, %arg1: i32, %arg2: i32) -> (i32, i32) {
    %c0_i32 = arith.constant 0 : i32
    return %arg2, %arg1 : i32, i32
  }
  func.func @transform_2(%arg0: i32, %arg1: i32, %arg2: i32) -> (i32, i32) {
    %c0_i32 = arith.constant 0 : i32
    %c0_i32_0 = arith.constant 0 : i32
    return %c0_i32, %arg1 : i32, i32
  }
  func.func @transform_3(%arg0: i32, %arg1: i32, %arg2: i32) -> (i32, i32) {
    %c0_i32 = arith.constant 0 : i32
    return %arg0, %arg1 : i32, i32
  }
}

module attributes {stable_mosaic.version = 11 : i64} {
  func.func @_flash_attn_kernel(%arg0: i32, %arg1: i32, %arg2: i32, %arg3: memref<1x4x8x8xf32, #tpu.memory_space<vmem>>, %arg4: memref<1x4x8x8xf32, #tpu.memory_space<vmem>>, %arg5: memref<1x4x8x8xf32, #tpu.memory_space<vmem>>, %arg6: memref<1x1x8xf32, #tpu.memory_space<vmem>>, %arg7: memref<1x4x8x8xf32, #tpu.memory_space<vmem>>, %arg8: memref<4x8x1xf32, #tpu.memory_space<vmem>>, %arg9: memref<4x8x1xf32, #tpu.memory_space<vmem>>, %arg10: memref<4x8x8xf32, #tpu.memory_space<vmem>>) attributes {dimension_semantics = [#tpu.dimension_semantics<parallel>, #tpu.dimension_semantics<parallel>, #tpu.dimension_semantics<arbitrary>], iteration_bounds = array<i64: 2, 1, 1>, scalar_prefetch = 0 : i64, scratch_operands = 3 : i64, tpu.core_type = #tpu.core_type<tc>, window_params = [{transform_indices = @transform_0, window_bounds = array<i64: 1, 4, 8, 8>}, {transform_indices = @transform_1, window_bounds = array<i64: 1, 4, 8, 8>}, {transform_indices = @transform_2, window_bounds = array<i64: 1, 4, 8, 8>}, {transform_indices = @transform_3, window_bounds = array<i64: 1, 1, 8>}, {transform_indices = @transform_4, window_bounds = array<i64: 1, 4, 8, 8>}]} {
    %c0_i32 = arith.constant 0 : i32
    %0 = arith.cmpi eq, %arg2, %c0_i32 : i32
    %1 = arith.extui %0 : i1 to i32
    %c0_i32_0 = arith.constant 0 : i32
    %2 = arith.cmpi ne, %1, %c0_i32_0 : i32
    scf.if %2 {
      %cst_41 = arith.constant 0xFF800000 : f32
      %46 = vector.broadcast %cst_41 : f32 to vector<4x8x1xf32>
      %c0_42 = arith.constant 0 : index
      %c0_43 = arith.constant 0 : index
      %c0_44 = arith.constant 0 : index
      %47 = vector.load %arg8[%c0_42, %c0_43, %c0_44] : memref<4x8x1xf32, #tpu.memory_space<vmem>>, vector<4x8x1xf32>
      tpu.vector_store %arg8[%c0_42, %c0_43, %c0_44], %46 {strides = array<i32>} : memref<4x8x1xf32, #tpu.memory_space<vmem>>, vector<4x8x1xf32>,
      %cst_45 = arith.constant 0.000000e+00 : f32
      %48 = vector.broadcast %cst_45 : f32 to vector<4x8x1xf32>
      %c0_46 = arith.constant 0 : index
      %c0_47 = arith.constant 0 : index
      %c0_48 = arith.constant 0 : index
      %49 = vector.load %arg9[%c0_46, %c0_47, %c0_48] : memref<4x8x1xf32, #tpu.memory_space<vmem>>, vector<4x8x1xf32>
      tpu.vector_store %arg9[%c0_46, %c0_47, %c0_48], %48 {strides = array<i32>} : memref<4x8x1xf32, #tpu.memory_space<vmem>>, vector<4x8x1xf32>,
      %cst_49 = arith.constant 0.000000e+00 : f32
      %50 = vector.broadcast %cst_49 : f32 to vector<4x8x8xf32>
      %c0_50 = arith.constant 0 : index
      %c0_51 = arith.constant 0 : index
      %c0_52 = arith.constant 0 : index
      %51 = vector.load %arg10[%c0_50, %c0_51, %c0_52] : memref<4x8x8xf32, #tpu.memory_space<vmem>>, vector<4x8x8xf32>
      tpu.vector_store %arg10[%c0_50, %c0_51, %c0_52], %50 {strides = array<i32>} : memref<4x8x8xf32, #tpu.memory_space<vmem>>, vector<4x8x8xf32>,
    } else {
    }
    %c0 = arith.constant 0 : index
    %c0_1 = arith.constant 0 : index
    %c0_2 = arith.constant 0 : index
    %c0_3 = arith.constant 0 : index
    %3 = vector.load %arg3[%c0, %c0_1, %c0_2, %c0_3] : memref<1x4x8x8xf32, #tpu.memory_space<vmem>>, vector<1x4x8x8xf32>
    %4 = vector.shape_cast %3 : vector<1x4x8x8xf32> to vector<4x8x8xf32>
    %c0_4 = arith.constant 0 : index
    %c0_5 = arith.constant 0 : index
    %c0_6 = arith.constant 0 : index
    %c0_7 = arith.constant 0 : index
    %5 = vector.load %arg4[%c0_4, %c0_5, %c0_6, %c0_7] : memref<1x4x8x8xf32, #tpu.memory_space<vmem>>, vector<1x4x8x8xf32>
    %6 = vector.shape_cast %5 : vector<1x4x8x8xf32> to vector<4x8x8xf32>
    %c0_8 = arith.constant 0 : index
    %c0_9 = arith.constant 0 : index
    %c0_10 = arith.constant 0 : index
    %c0_11 = arith.constant 0 : index
    %7 = vector.load %arg5[%c0_8, %c0_9, %c0_10, %c0_11] : memref<1x4x8x8xf32, #tpu.memory_space<vmem>>, vector<1x4x8x8xf32>
    %8 = vector.shape_cast %7 : vector<1x4x8x8xf32> to vector<4x8x8xf32>
    %c0_12 = arith.constant 0 : index
    %c0_13 = arith.constant 0 : index
    %c0_14 = arith.constant 0 : index
    %9 = vector.load %arg6[%c0_12, %c0_13, %c0_14] : memref<1x1x8xf32, #tpu.memory_space<vmem>>, vector<1x1x8xf32>
    %10 = vector.shape_cast %9 : vector<1x1x8xf32> to vector<1x8xf32>
    "tpu.trace_start"() <{level = 10 : i32, message = "hqd,hkd->hqk"}> : () -> ()
    %cst = arith.constant dense<0.000000e+00> : vector<4x8x8xf32>
    %11 = tpu.matmul %4, %6, %cst {dimension_numbers = #tpu.dot_dimension_numbers<[2], [2], [1], [1], [0, 0, 0, 1, 1, 1], [0], [0]>} : vector<4x8x8xf32>, vector<4x8x8xf32>, vector<4x8x8xf32> -> vector<4x8x8xf32>
    "tpu.trace_stop"() : () -> ()
    %cst_15 = arith.constant 0.353553385 : f32
    %12 = vector.broadcast %cst_15 : f32 to vector<4x8x8xf32>
    %13 = arith.mulf %11, %12 : vector<4x8x8xf32>
    %14 = vector.shape_cast %10 : vector<1x8xf32> to vector<1x1x8xf32>
    %cst_16 = arith.constant 5.000000e-01 : f32
    %15 = vector.broadcast %cst_16 : f32 to vector<1x1x8xf32>
    %16 = arith.cmpf ogt, %14, %15 : vector<1x1x8xf32>
    %cst_17 = arith.constant -1.000000e+09 : f32
    %17 = vector.shape_cast %16 : vector<1x1x8xi1> to vector<1x1x8xi1>
    %18 = vector.broadcast %17 : vector<1x1x8xi1> to vector<4x8x8xi1>
    %19 = vector.broadcast %cst_17 : f32 to vector<4x8x8xf32>
    %20 = arith.select %18, %13, %19 : vector<4x8x8xi1>, vector<4x8x8xf32>
    %c0_18 = arith.constant 0 : index
    %c0_19 = arith.constant 0 : index
    %c0_20 = arith.constant 0 : index
    %21 = vector.load %arg8[%c0_18, %c0_19, %c0_20] : memref<4x8x1xf32, #tpu.memory_space<vmem>>, vector<4x8x1xf32>
    %cst_21 = arith.constant dense<0xFF800000> : vector<4x8xf32>
    %22 = vector.multi_reduction <maximumf>, %20, %cst_21 [2] : vector<4x8x8xf32> to vector<4x8xf32>
    %23 = vector.shape_cast %22 : vector<4x8xf32> to vector<4x8x1xf32>
    %24 = arith.maximumf %21, %23 : vector<4x8x1xf32>
    %25 = arith.subf %21, %24 : vector<4x8x1xf32>
    %26 = math.exp %25 : vector<4x8x1xf32>
    %27 = vector.broadcast %24 : vector<4x8x1xf32> to vector<4x8x8xf32>
    %28 = arith.subf %20, %27 : vector<4x8x8xf32>
    %29 = math.exp %28 : vector<4x8x8xf32>
    %c0_22 = arith.constant 0 : index
    %c0_23 = arith.constant 0 : index
    %c0_24 = arith.constant 0 : index
    %30 = vector.load %arg9[%c0_22, %c0_23, %c0_24] : memref<4x8x1xf32, #tpu.memory_space<vmem>>, vector<4x8x1xf32>
    %31 = arith.mulf %26, %30 : vector<4x8x1xf32>
    %cst_25 = arith.constant dense<0.000000e+00> : vector<4x8xf32>
    %32 = vector.multi_reduction <add>, %29, %cst_25 [2] : vector<4x8x8xf32> to vector<4x8xf32>
    %33 = vector.shape_cast %32 : vector<4x8xf32> to vector<4x8x1xf32>
    %34 = arith.addf %31, %33 : vector<4x8x1xf32>
    %c0_26 = arith.constant 0 : index
    %c0_27 = arith.constant 0 : index
    %c0_28 = arith.constant 0 : index
    %35 = vector.load %arg9[%c0_26, %c0_27, %c0_28] : memref<4x8x1xf32, #tpu.memory_space<vmem>>, vector<4x8x1xf32>
    tpu.vector_store %arg9[%c0_26, %c0_27, %c0_28], %34 {strides = array<i32>} : memref<4x8x1xf32, #tpu.memory_space<vmem>>, vector<4x8x1xf32>,
    %c0_29 = arith.constant 0 : index
    %c0_30 = arith.constant 0 : index
    %c0_31 = arith.constant 0 : index
    %36 = vector.load %arg10[%c0_29, %c0_30, %c0_31] : memref<4x8x8xf32, #tpu.memory_space<vmem>>, vector<4x8x8xf32>
    %37 = vector.broadcast %26 : vector<4x8x1xf32> to vector<4x8x8xf32>
    %38 = arith.mulf %37, %36 : vector<4x8x8xf32>
    "tpu.trace_start"() <{level = 10 : i32, message = "hqk,hkd->hqd"}> : () -> ()
    %cst_32 = arith.constant dense<0.000000e+00> : vector<4x8x8xf32>
    %39 = tpu.matmul %29, %8, %cst_32 {dimension_numbers = #tpu.dot_dimension_numbers<[2], [1], [1], [2], [0, 0, 0, 1, 1, 2], [0], [0]>} : vector<4x8x8xf32>, vector<4x8x8xf32>, vector<4x8x8xf32> -> vector<4x8x8xf32>
    "tpu.trace_stop"() : () -> ()
    %40 = arith.addf %38, %39 : vector<4x8x8xf32>
    %c0_33 = arith.constant 0 : index
    %c0_34 = arith.constant 0 : index
    %c0_35 = arith.constant 0 : index
    %41 = vector.load %arg10[%c0_33, %c0_34, %c0_35] : memref<4x8x8xf32, #tpu.memory_space<vmem>>, vector<4x8x8xf32>
    tpu.vector_store %arg10[%c0_33, %c0_34, %c0_35], %40 {strides = array<i32>} : memref<4x8x8xf32, #tpu.memory_space<vmem>>, vector<4x8x8xf32>,
    %c0_36 = arith.constant 0 : index
    %c0_37 = arith.constant 0 : index
    %c0_38 = arith.constant 0 : index
    %42 = vector.load %arg8[%c0_36, %c0_37, %c0_38] : memref<4x8x1xf32, #tpu.memory_space<vmem>>, vector<4x8x1xf32>
    tpu.vector_store %arg8[%c0_36, %c0_37, %c0_38], %24 {strides = array<i32>} : memref<4x8x1xf32, #tpu.memory_space<vmem>>, vector<4x8x1xf32>,
    %c0_i32_39 = arith.constant 0 : i32
    %43 = arith.cmpi eq, %arg2, %c0_i32_39 : i32
    %44 = arith.extui %43 : i1 to i32
    %c0_i32_40 = arith.constant 0 : i32
    %45 = arith.cmpi ne, %44, %c0_i32_40 : i32
    scf.if %45 {
      %c0_41 = arith.constant 0 : index
      %c0_42 = arith.constant 0 : index
      %c0_43 = arith.constant 0 : index
      %46 = vector.load %arg10[%c0_41, %c0_42, %c0_43] : memref<4x8x8xf32, #tpu.memory_space<vmem>>, vector<4x8x8xf32>
      %c0_44 = arith.constant 0 : index
      %c0_45 = arith.constant 0 : index
      %c0_46 = arith.constant 0 : index
      %47 = vector.load %arg9[%c0_44, %c0_45, %c0_46] : memref<4x8x1xf32, #tpu.memory_space<vmem>>, vector<4x8x1xf32>
      %48 = tpu.reciprocal %47 {approx = true} : vector<4x8x1xf32> -> vector<4x8x1xf32>
      %49 = vector.broadcast %48 : vector<4x8x1xf32> to vector<4x8x8xf32>
      %50 = arith.mulf %46, %49 : vector<4x8x8xf32>
      %c0_47 = arith.constant 0 : index
      %c0_48 = arith.constant 0 : index
      %c0_49 = arith.constant 0 : index
      %c0_50 = arith.constant 0 : index
      %51 = vector.load %arg7[%c0_47, %c0_48, %c0_49, %c0_50] : memref<1x4x8x8xf32, #tpu.memory_space<vmem>>, vector<1x4x8x8xf32>
      %52 = vector.shape_cast %51 : vector<1x4x8x8xf32> to vector<4x8x8xf32>
      %53 = vector.shape_cast %50 : vector<4x8x8xf32> to vector<1x4x8x8xf32>
      tpu.vector_store %arg7[%c0_47, %c0_48, %c0_49, %c0_50], %53 {strides = array<i32>} : memref<1x4x8x8xf32, #tpu.memory_space<vmem>>, vector<1x4x8x8xf32>,
    } else {
    }
    return
  }
  func.func @transform_0(%arg0: i32, %arg1: i32, %arg2: i32) -> (i32, i32, i32, i32) {
    %c0_i32 = arith.constant 0 : i32
    %c0_i32_0 = arith.constant 0 : i32
    %c0_i32_1 = arith.constant 0 : i32
    return %arg0, %c0_i32, %arg1, %c0_i32_0 : i32, i32, i32, i32
  }
  func.func @transform_1(%arg0: i32, %arg1: i32, %arg2: i32) -> (i32, i32, i32, i32) {
    %c0_i32 = arith.constant 0 : i32
    %c0_i32_0 = arith.constant 0 : i32
    %c0_i32_1 = arith.constant 0 : i32
    return %arg0, %c0_i32, %arg2, %c0_i32_0 : i32, i32, i32, i32
  }
  func.func @transform_2(%arg0: i32, %arg1: i32, %arg2: i32) -> (i32, i32, i32, i32) {
    %c0_i32 = arith.constant 0 : i32
    %c0_i32_0 = arith.constant 0 : i32
    %c0_i32_1 = arith.constant 0 : i32
    return %arg0, %c0_i32, %arg2, %c0_i32_0 : i32, i32, i32, i32
  }
  func.func @transform_3(%arg0: i32, %arg1: i32, %arg2: i32) -> (i32, i32, i32) {
    %c0_i32 = arith.constant 0 : i32
    %c0_i32_0 = arith.constant 0 : i32
    return %arg0, %c0_i32, %arg2 : i32, i32, i32
  }
  func.func @transform_4(%arg0: i32, %arg1: i32, %arg2: i32) -> (i32, i32, i32, i32) {
    %c0_i32 = arith.constant 0 : i32
    %c0_i32_0 = arith.constant 0 : i32
    %c0_i32_1 = arith.constant 0 : i32
    return %arg0, %c0_i32, %arg1, %c0_i32_0 : i32, i32, i32, i32
  }
}

module attributes {stable_mosaic.version = 11 : i64} {
  func.func @_ln_residual_kernel(%arg0: i32, %arg1: memref<16x32xf32, #tpu.memory_space<vmem>>, %arg2: memref<16x32xf32, #tpu.memory_space<vmem>>, %arg3: memref<1x32xf32, #tpu.memory_space<vmem>>, %arg4: memref<1x32xf32, #tpu.memory_space<vmem>>, %arg5: memref<16x32xf32, #tpu.memory_space<vmem>>) attributes {dimension_semantics = [#tpu.dimension_semantics<parallel>], iteration_bounds = array<i64: 1>, scalar_prefetch = 0 : i64, scratch_operands = 0 : i64, tpu.core_type = #tpu.core_type<tc>, window_params = [{transform_indices = @transform_0, window_bounds = array<i64: 16, 32>}, {transform_indices = @transform_1, window_bounds = array<i64: 16, 32>}, {pipeline_mode = #tpu.pipeline_mode<synchronous>, transform_indices = @transform_2, window_bounds = array<i64: 1, 32>}, {pipeline_mode = #tpu.pipeline_mode<synchronous>, transform_indices = @transform_3, window_bounds = array<i64: 1, 32>}, {transform_indices = @transform_4, window_bounds = array<i64: 16, 32>}]} {
    %c0 = arith.constant 0 : index
    %c0_0 = arith.constant 0 : index
    %0 = vector.load %arg1[%c0, %c0_0] : memref<16x32xf32, #tpu.memory_space<vmem>>, vector<16x32xf32>
    %c0_1 = arith.constant 0 : index
    %c0_2 = arith.constant 0 : index
    %1 = vector.load %arg2[%c0_1, %c0_2] : memref<16x32xf32, #tpu.memory_space<vmem>>, vector<16x32xf32>
    %2 = arith.addf %0, %1 : vector<16x32xf32>
    %cst = arith.constant dense<0.000000e+00> : vector<16xf32>
    %3 = vector.multi_reduction <add>, %2, %cst [1] : vector<16x32xf32> to vector<16xf32>
    %4 = vector.shape_cast %3 : vector<16xf32> to vector<16x1xf32>
    %cst_3 = arith.constant 3.200000e+01 : f32
    %5 = vector.broadcast %cst_3 : f32 to vector<16x1xf32>
    %6 = arith.divf %4, %5 : vector<16x1xf32>
    %7 = vector.broadcast %6 : vector<16x1xf32> to vector<16x32xf32>
    %8 = arith.subf %2, %7 : vector<16x32xf32>
    %9 = arith.mulf %8, %8 : vector<16x32xf32>
    %cst_4 = arith.constant dense<0.000000e+00> : vector<16xf32>
    %10 = vector.multi_reduction <add>, %9, %cst_4 [1] : vector<16x32xf32> to vector<16xf32>
    %11 = vector.shape_cast %10 : vector<16xf32> to vector<16x1xf32>
    %cst_5 = arith.constant 3.200000e+01 : f32
    %12 = vector.broadcast %cst_5 : f32 to vector<16x1xf32>
    %13 = arith.divf %11, %12 : vector<16x1xf32>
    %14 = vector.broadcast %6 : vector<16x1xf32> to vector<16x32xf32>
    %15 = arith.subf %2, %14 : vector<16x32xf32>
    %cst_6 = arith.constant 9.99999974E-6 : f32
    %16 = vector.broadcast %cst_6 : f32 to vector<16x1xf32>
    %17 = arith.addf %13, %16 : vector<16x1xf32>
    %18 = math.rsqrt %17 : vector<16x1xf32>
    %19 = vector.broadcast %18 : vector<16x1xf32> to vector<16x32xf32>
    %20 = arith.mulf %15, %19 : vector<16x32xf32>
    %c0_7 = arith.constant 0 : index
    %c0_8 = arith.constant 0 : index
    %21 = vector.load %arg3[%c0_7, %c0_8] : memref<1x32xf32, #tpu.memory_space<vmem>>, vector<1x32xf32>
    %22 = vector.broadcast %21 : vector<1x32xf32> to vector<16x32xf32>
    %23 = arith.mulf %20, %22 : vector<16x32xf32>
    %c0_9 = arith.constant 0 : index
    %c0_10 = arith.constant 0 : index
    %24 = vector.load %arg4[%c0_9, %c0_10] : memref<1x32xf32, #tpu.memory_space<vmem>>, vector<1x32xf32>
    %25 = vector.broadcast %24 : vector<1x32xf32> to vector<16x32xf32>
    %26 = arith.addf %23, %25 : vector<16x32xf32>
    %c0_11 = arith.constant 0 : index
    %c0_12 = arith.constant 0 : index
    %27 = vector.load %arg5[%c0_11, %c0_12] : memref<16x32xf32, #tpu.memory_space<vmem>>, vector<16x32xf32>
    tpu.vector_store %arg5[%c0_11, %c0_12], %26 {strides = array<i32>} : memref<16x32xf32, #tpu.memory_space<vmem>>, vector<16x32xf32>,
    return
  }
  func.func @transform_0(%arg0: i32) -> (i32, i32) {
    %c0_i32 = arith.constant 0 : i32
    %c0_i32_0 = arith.constant 0 : i32
    return %arg0, %c0_i32 : i32, i32
  }
  func.func @transform_1(%arg0: i32) -> (i32, i32) {
    %c0_i32 = arith.constant 0 : i32
    %c0_i32_0 = arith.constant 0 : i32
    return %arg0, %c0_i32 : i32, i32
  }
  func.func @transform_2(%arg0: i32) -> (i32, i32) {
    %c0_i32 = arith.constant 0 : i32
    %c0_i32_0 = arith.constant 0 : i32
    %c0_i32_1 = arith.constant 0 : i32
    return %c0_i32, %c0_i32_0 : i32, i32
  }
  func.func @transform_3(%arg0: i32) -> (i32, i32) {
    %c0_i32 = arith.constant 0 : i32
    %c0_i32_0 = arith.constant 0 : i32
    %c0_i32_1 = arith.constant 0 : i32
    return %c0_i32, %c0_i32_0 : i32, i32
  }
  func.func @transform_4(%arg0: i32) -> (i32, i32) {
    %c0_i32 = arith.constant 0 : i32
    %c0_i32_0 = arith.constant 0 : i32
    return %arg0, %c0_i32 : i32, i32
  }
}

module attributes {stable_mosaic.version = 11 : i64} {
  func.func @_ffn_kernel(%arg0: i32, %arg1: i32, %arg2: memref<16x128xf32, #tpu.memory_space<vmem>>, %arg3: memref<128x128xf32, #tpu.memory_space<vmem>>, %arg4: memref<1x128xf32, #tpu.memory_space<vmem>>, %arg5: memref<128x128xf32, #tpu.memory_space<vmem>>, %arg6: memref<1x128xf32, #tpu.memory_space<vmem>>, %arg7: memref<16x128xf32, #tpu.memory_space<vmem>>) attributes {dimension_semantics = [#tpu.dimension_semantics<parallel>, #tpu.dimension_semantics<arbitrary>], iteration_bounds = array<i64: 1, 1>, scalar_prefetch = 0 : i64, scratch_operands = 0 : i64, tpu.core_type = #tpu.core_type<tc>, window_params = [{transform_indices = @transform_0, window_bounds = array<i64: 16, 128>}, {transform_indices = @transform_1, window_bounds = array<i64: 128, 128>}, {transform_indices = @transform_2, window_bounds = array<i64: 1, 128>}, {transform_indices = @transform_3, window_bounds = array<i64: 128, 128>}, {pipeline_mode = #tpu.pipeline_mode<synchronous>, transform_indices = @transform_4, window_bounds = array<i64: 1, 128>}, {transform_indices = @transform_5, window_bounds = array<i64: 16, 128>}]} {
    %c0_i32 = arith.constant 0 : i32
    %0 = arith.cmpi eq, %arg1, %c0_i32 : i32
    %1 = arith.extui %0 : i1 to i32
    %c0_i32_0 = arith.constant 0 : i32
    %2 = arith.cmpi ne, %1, %c0_i32_0 : i32
    scf.if %2 {
      %cst_16 = arith.constant 0.000000e+00 : f32
      %19 = vector.broadcast %cst_16 : f32 to vector<16x128xf32>
      %c0_17 = arith.constant 0 : index
      %c0_18 = arith.constant 0 : index
      %20 = vector.load %arg7[%c0_17, %c0_18] : memref<16x128xf32, #tpu.memory_space<vmem>>, vector<16x128xf32>
      tpu.vector_store %arg7[%c0_17, %c0_18], %19 {strides = array<i32>} : memref<16x128xf32, #tpu.memory_space<vmem>>, vector<16x128xf32>,
    } else {
    }
    %c0 = arith.constant 0 : index
    %c0_1 = arith.constant 0 : index
    %3 = vector.load %arg2[%c0, %c0_1] : memref<16x128xf32, #tpu.memory_space<vmem>>, vector<16x128xf32>
    %c0_2 = arith.constant 0 : index
    %c0_3 = arith.constant 0 : index
    %4 = vector.load %arg3[%c0_2, %c0_3] : memref<128x128xf32, #tpu.memory_space<vmem>>, vector<128x128xf32>
    %cst = arith.constant dense<0.000000e+00> : vector<16x128xf32>
    %5 = tpu.matmul %3, %4, %cst {dimension_numbers = #tpu.dot_dimension_numbers<[1], [0], [0], [1], [0, 0, 1, 1], [], []>} : vector<16x128xf32>, vector<128x128xf32>, vector<16x128xf32> -> vector<16x128xf32>
    %c0_4 = arith.constant 0 : index
    %c0_5 = arith.constant 0 : index
    %6 = vector.load %arg4[%c0_4, %c0_5] : memref<1x128xf32, #tpu.memory_space<vmem>>, vector<1x128xf32>
    %7 = vector.broadcast %6 : vector<1x128xf32> to vector<16x128xf32>
    %8 = arith.addf %5, %7 : vector<16x128xf32>
    %cst_6 = arith.constant 0.000000e+00 : f32
    %9 = vector.broadcast %cst_6 : f32 to vector<16x128xf32>
    %10 = arith.maximumf %8, %9 : vector<16x128xf32>
    %c0_7 = arith.constant 0 : index
    %c0_8 = arith.constant 0 : index
    %11 = vector.load %arg7[%c0_7, %c0_8] : memref<16x128xf32, #tpu.memory_space<vmem>>, vector<16x128xf32>
    %c0_9 = arith.constant 0 : index
    %c0_10 = arith.constant 0 : index
    %12 = vector.load %arg5[%c0_9, %c0_10] : memref<128x128xf32, #tpu.memory_space<vmem>>, vector<128x128xf32>
    %cst_11 = arith.constant dense<0.000000e+00> : vector<16x128xf32>
    %13 = tpu.matmul %10, %12, %cst_11 {dimension_numbers = #tpu.dot_dimension_numbers<[1], [0], [0], [1], [0, 0, 1, 1], [], []>} : vector<16x128xf32>, vector<128x128xf32>, vector<16x128xf32> -> vector<16x128xf32>
    %14 = arith.addf %11, %13 : vector<16x128xf32>
    %c0_12 = arith.constant 0 : index
    %c0_13 = arith.constant 0 : index
    %15 = vector.load %arg7[%c0_12, %c0_13] : memref<16x128xf32, #tpu.memory_space<vmem>>, vector<16x128xf32>
    tpu.vector_store %arg7[%c0_12, %c0_13], %14 {strides = array<i32>} : memref<16x128xf32, #tpu.memory_space<vmem>>, vector<16x128xf32>,
    %c0_i32_14 = arith.constant 0 : i32
    %16 = arith.cmpi eq, %arg1, %c0_i32_14 : i32
    %17 = arith.extui %16 : i1 to i32
    %c0_i32_15 = arith.constant 0 : i32
    %18 = arith.cmpi ne, %17, %c0_i32_15 : i32
    scf.if %18 {
      %c0_16 = arith.constant 0 : index
      %c0_17 = arith.constant 0 : index
      %19 = vector.load %arg7[%c0_16, %c0_17] : memref<16x128xf32, #tpu.memory_space<vmem>>, vector<16x128xf32>
      %c0_18 = arith.constant 0 : index
      %c0_19 = arith.constant 0 : index
      %20 = vector.load %arg6[%c0_18, %c0_19] : memref<1x128xf32, #tpu.memory_space<vmem>>, vector<1x128xf32>
      %21 = vector.broadcast %20 : vector<1x128xf32> to vector<16x128xf32>
      %22 = arith.addf %19, %21 : vector<16x128xf32>
      %c0_20 = arith.constant 0 : index
      %c0_21 = arith.constant 0 : index
      %23 = vector.load %arg7[%c0_20, %c0_21] : memref<16x128xf32, #tpu.memory_space<vmem>>, vector<16x128xf32>
      tpu.vector_store %arg7[%c0_20, %c0_21], %22 {strides = array<i32>} : memref<16x128xf32, #tpu.memory_space<vmem>>, vector<16x128xf32>,
    } else {
    }
    return
  }
  func.func @transform_0(%arg0: i32, %arg1: i32) -> (i32, i32) {
    %c0_i32 = arith.constant 0 : i32
    %c0_i32_0 = arith.constant 0 : i32
    return %arg0, %c0_i32 : i32, i32
  }
  func.func @transform_1(%arg0: i32, %arg1: i32) -> (i32, i32) {
    %c0_i32 = arith.constant 0 : i32
    %c0_i32_0 = arith.constant 0 : i32
    return %c0_i32, %arg1 : i32, i32
  }
  func.func @transform_2(%arg0: i32, %arg1: i32) -> (i32, i32) {
    %c0_i32 = arith.constant 0 : i32
    %c0_i32_0 = arith.constant 0 : i32
    return %c0_i32, %arg1 : i32, i32
  }
  func.func @transform_3(%arg0: i32, %arg1: i32) -> (i32, i32) {
    %c0_i32 = arith.constant 0 : i32
    %c0_i32_0 = arith.constant 0 : i32
    return %arg1, %c0_i32 : i32, i32
  }
  func.func @transform_4(%arg0: i32, %arg1: i32) -> (i32, i32) {
    %c0_i32 = arith.constant 0 : i32
    %c0_i32_0 = arith.constant 0 : i32
    %c0_i32_1 = arith.constant 0 : i32
    return %c0_i32, %c0_i32_0 : i32, i32
  }
  func.func @transform_5(%arg0: i32, %arg1: i32) -> (i32, i32) {
    %c0_i32 = arith.constant 0 : i32
    %c0_i32_0 = arith.constant 0 : i32
    return %arg0, %c0_i32 : i32, i32
  }
}

</mosaic_0001>

<bundles_post_ra>
// kernel: transformer_forward.50
= control target key start
LH: loop header
LB: loop body
LE: loop exit
PB: predicated region body
PF: predicated region fallthrough
CT: control target
= control target key end

     0   :  { %vm23_vm0 = vcmask 261120   ;;  %s136_s0 = inlined_call_operand.vmem [shape: f32[16,32], index: 0, kind: input, shape index: {}]   ;;  %s137_s1 = inlined_call_operand.vmem [shape: f32[16,32], index: 1, kind: input, shape index: {}]   ;;  %s138_s2 = inlined_call_operand.vmem [shape: f32[1,32], index: 2, kind: input, shape index: {}]   ;;  %s139_s3 = inlined_call_operand.vmem [shape: f32[1,32], index: 3, kind: input, shape index: {}]   ;;  %s140_s4 = inlined_call_operand.vmem [shape: f32[16,32], index: 4, kind: output, shape index: {}]  }
   0x1   :  { %v17_v0 = vld [vmem:[%s136_s0] sm:$0xff]  ;;  %v18_v2 = vld [vmem:[%s136_s0 + $0x8] sm:$0xff] }
   0x2   :  { %v19_v1 = vld [vmem:[%s137_s1] sm:$0xff]  ;;  %v20_v4 = vld [vmem:[%s137_s1 + $0x8] sm:$0xff] }
   0x3   :  { %v21_v3 = vadd.f32 %v19_v1, %v17_v0  ;;  %v22_v5 = vadd.f32 %v20_v4, %v18_v2  ;;  %v75_v25 = vld [vmem:[%s138_s2] ss:$0 sm:$0xff] }
   0x4   :  { %v76_v27 = vld [vmem:[%s139_s3] ss:$0 sm:$0xff] }
   0x5   :  { %v24_v6 = vsel %vm23_vm0, %v21_v3, 0.0  ;;  %v27_v7 = vsel %vm23_vm0, %v22_v5, 0.0 }
   0x6   :  { %25 = vadd.xlane.f32.xlu0 %v24_v6 }
   0xa   :  { %28 = vadd.xlane.f32.xlu0 %v27_v7 }
  0x8f   :  { %v26_v8 = vpop.xlane.xlu0 %25 }
  0x90   :  { %v31_v9 = vmul.f32 0.03125, %v26_v8 }
  0x92   :  { %v33_v10 = vsub.f32 %v21_v3, %v31_v9 }
  0x93   :  { %v29_v11 = vpop.xlane.xlu0 %28 }
  0x94   :  { %v32_v12 = vmul.f32 0.03125, %v29_v11  ;;  %v35_v13 = vmul.f32 %v33_v10, %v33_v10 }
  0x96   :  { %v34_v14 = vsub.f32 %v22_v5, %v32_v12  ;;  %v37_v15 = vsel %vm23_vm0, %v35_v13, 0.0 }
  0x97   :  { %38 = vadd.xlane.f32.xlu1 %v37_v15 }
  0x98   :  { %v36_v16 = vmul.f32 %v34_v14, %v34_v14 }
  0x9a   :  { %v40_v17 = vsel %vm23_vm0, %v36_v16, 0.0 }
  0x9b   :  { %41 = vadd.xlane.f32.xlu1 %v40_v17 }
 0x120   :  { %v39_v18 = vpop.xlane.xlu1 %38 }
 0x121   :  { %v43_v19 = vmul.f32 0.03125, %v39_v18 }
 0x123   :  { %v45_v20 = vadd.f32 1e-05, %v43_v19 }
 0x124   :  { %v42_v21 = vpop.xlane.xlu1 %41 }
 0x125   :  { %77 = vrsqrt.f32 %v45_v20  ;;  %v44_v22 = vmul.f32 0.03125, %v42_v21 }
 0x127   :  { %v46_v23 = vadd.f32 1e-05, %v44_v22 }
 0x129   :  { %79 = vrsqrt.f32 %v46_v23 }
 0x132   :  { %v78_v24 = vpop.eup %77 }
 0x133   :  { %v49_v26 = vmul.f32 %v78_v24, %v33_v10 }
 0x135   :  { %v58_v28 = vmul.f32 %v75_v25, %v49_v26 }
 0x136   :  { %v80_v29 = vpop.eup %79 }
 0x137   :  { %v67_v30 = vadd.f32 %v76_v27, %v58_v28  ;;  %v50_v31 = vmul.f32 %v80_v29, %v34_v14 }
 0x139   :  { %69 = vst.msk [vmem:[%s140_s4] sm:$0xff] %vm23_vm0, %v67_v30  ;;  %v59_v32 = vmul.f32 %v75_v25, %v50_v31 }
 0x13b   :  { %v68_v33 = vadd.f32 %v76_v27, %v59_v32 }
 0x13d   :  { %70 = vst.msk [vmem:[%s140_s4 + $0x8] sm:$0xff] %vm23_vm0, %v68_v33 }

// kernel: transformer_forward.47
= control target key start
LH: loop header
LB: loop body
LE: loop exit
PB: predicated region body
PF: predicated region fallthrough
CT: control target
= control target key end

     0   :  { %s277_s1 = inlined_call_operand.vmem [shape: f32[128,128], index: 1, kind: input, shape index: {}]   ;;  %s278_s0 = inlined_call_operand.vmem [shape: f32[16,128], index: 0, kind: input, shape index: {}]   ;;  %s279_s2 = inlined_call_operand.vmem [shape: f32[1,128], index: 2, kind: input, shape index: {}]   ;;  %s280_s3 = inlined_call_operand.vmem [shape: f32[16,128], index: 3, kind: output, shape index: {}]  }
   0x1   :  { %v39_v0 = vld [vmem:[%s277_s1 + $0x78] sm:$0xff]  ;;  %v38_v1 = vld [vmem:[%s277_s1 + $0x70] sm:$0xff]  ;;  %v37_v2 = vld [vmem:[%s277_s1 + $0x68] sm:$0xff] }
   0x2   :  { %158 = vmatprep.subr.mxu0 %v39_v0  ;;  %v36_v3 = vld [vmem:[%s277_s1 + $0x60] sm:$0xff]  ;;  %v35_v5 = vld [vmem:[%s277_s1 + $0x58] sm:$0xff]  ;;  %v34_v6 = vld [vmem:[%s277_s1 + $0x50] sm:$0xff] }
   0x3   :  { %159 = vmatpush3.msra.mxu0 %v39_v0  ;;  %v22_v4 = vld [vmem:[%s278_s0] sm:$0xff]  ;;  %v33_v7 = vld [vmem:[%s277_s1 + $0x48] sm:$0xff]  ;;  %v31_v9 = vld [vmem:[%s277_s1 + $0x38] sm:$0xff] }
   0x4   :  { %160 = vmatprep.subr.mxu0 %v38_v1  ;;  %190 = vmatprep.mubr.f32.mxu0 %v22_v4  ;;  %v32_v8 = vld [vmem:[%s277_s1 + $0x40] sm:$0xff]  ;;  %v30_v10 = vld [vmem:[%s277_s1 + $0x30] sm:$0xff]  ;;  %v29_v11 = vld [vmem:[%s277_s1 + $0x28] sm:$0xff] }
   0x5   :  { %161 = vmatpush3.msra.mxu0 %v38_v1  ;;  %v28_v12 = vld [vmem:[%s277_s1 + $0x20] sm:$0xff]  ;;  %v27_v13 = vld [vmem:[%s277_s1 + $0x18] sm:$0xff]  ;;  %v26_v14 = vld [vmem:[%s277_s1 + $0x10] sm:$0xff] }
   0x6   :  { %162 = vmatprep.subr.mxu0 %v37_v2  ;;  %v25_v15 = vld [vmem:[%s277_s1 + $0x8] sm:$0xff]  ;;  %v24_v16 = vld [vmem:[%s277_s1] sm:$0xff] }
   0x7   :  { %163 = vmatpush3.msra.mxu0 %v37_v2  ;;  %v23_v17 = vld [vmem:[%s278_s0 + $0x8] sm:$0xff]  ;;  %v139_v19 = vld [vmem:[%s279_s2] ss:$0 sm:$0xff] }
   0x8   :  { %164 = vmatprep.subr.mxu0 %v36_v3 }
   0x9   :  { %165 = vmatpush3.msra.mxu0 %v36_v3 }
   0xa   :  { %166 = vmatprep.subr.mxu0 %v35_v5 }
   0xb   :  { %167 = vmatpush3.msra.mxu0 %v35_v5 }
   0xc   :  { %168 = vmatprep.subr.mxu0 %v34_v6 }
   0xd   :  { %169 = vmatpush3.msra.mxu0 %v34_v6 }
   0xe   :  { %170 = vmatprep.subr.mxu0 %v33_v7 }
   0xf   :  { %171 = vmatpush3.msra.mxu0 %v33_v7 }
  0x10   :  { %172 = vmatprep.subr.mxu0 %v32_v8 }
  0x11   :  { %173 = vmatpush3.msra.mxu0 %v32_v8 }
  0x12   :  { %174 = vmatprep.subr.mxu0 %v31_v9 }
  0x13   :  { %175 = vmatpush3.msra.mxu0 %v31_v9 }
  0x14   :  { %176 = vmatprep.subr.mxu0 %v30_v10 }
  0x15   :  { %177 = vmatpush3.msra.mxu0 %v30_v10 }
  0x16   :  { %178 = vmatprep.subr.mxu0 %v29_v11 }
  0x17   :  { %179 = vmatpush3.msra.mxu0 %v29_v11 }
  0x18   :  { %180 = vmatprep.subr.mxu0 %v28_v12 }
  0x19   :  { %181 = vmatpush3.msra.mxu0 %v28_v12 }
  0x1a   :  { %182 = vmatprep.subr.mxu0 %v27_v13 }
  0x1b   :  { %183 = vmatpush3.msra.mxu0 %v27_v13 }
  0x1c   :  { %184 = vmatprep.subr.mxu0 %v26_v14 }
  0x1d   :  { %185 = vmatpush3.msra.mxu0 %v26_v14 }
  0x1e   :  { %186 = vmatprep.subr.mxu0 %v25_v15 }
  0x1f   :  { %187 = vmatpush3.msra.mxu0 %v25_v15 }
  0x20   :  { %188 = vmatprep.subr.mxu0 %v24_v16 }
  0x21   :  { %189 = vmatpush3.msra.mxu0 %v24_v16 }
  0x22   :  { %191 = vmatmul.mubr.f32.vlgmr.msra.gmra.mxu0 %v23_v17 }
  0xe2   :  { %v192_v18 = vpop.f32.mrf.mxu0 }
  0xe3   :  { %v132_v21 = vadd.f32 %v192_v18, %v139_v19 }
  0xe4   :  { %v106_v20 = vpop.f32.mrf.mxu0 }
  0xe5   :  { %134 = vst [vmem:[%s280_s3 + $0x8] sm:$0xff] %v132_v21  ;;  %v131_v22 = vadd.f32 %v139_v19, %v106_v20 }
  0xe7   :  { %133 = vst [vmem:[%s280_s3] sm:$0xff] %v131_v22 }

// kernel: transformer_forward.48
= control target key start
LH: loop header
LB: loop body
LE: loop exit
PB: predicated region body
PF: predicated region fallthrough
CT: control target
= control target key end

     0   :  { %s1470_s15 = smov 0   ;;  %s1472_s16 = smov 0   ;;  %s1629_s0 = inlined_call_operand.vmem [shape: f32[2,4,8,8], index: 0, kind: input, shape index: {}]   ;;  %s1630_s1 = inlined_call_operand.vmem [shape: f32[2,4,8,8], index: 1, kind: input, shape index: {}]   ;;  %s1631_s2 = inlined_call_operand.vmem [shape: f32[2,4,8,8], index: 2, kind: input, shape index: {}]   ;;  %s1632_s3 = inlined_call_operand.vmem [shape: f32[2,1,8], index: 3, kind: input, shape index: {}]   ;;  %s1633_s4 = inlined_call_operand.vmem [shape: f32[2,4,8,8], index: 4, kind: output, shape index: {}]  }
   0x1   :  { %s1474_s17 = smov 0  }
   0x2 LB: > { %s33_s18 = sadd.s32 1, %s1435_s16  ;;  %p1280_p0 = scmp.ge.s32.totalorder %s1439_s17, 1  ;;  %s1439_s17 = sphi %s1474_s17, %s14_s17   ;;  %s1435_s16 = sphi %s1472_s16, %s1635_s16   ;;  %s1431_s15 = sphi %s1470_s15, %s1634_s15  }
   0x3   : > { %p35_p1 = scmp.ge.s32.totalorder %s33_s18, 2  ;;  %p231_p2 = scmp.lt.s32.totalorder %s1439_s17, 3 }
   0x5   : > { %s1637_s18 = smov (%p35_p1, %s33_s18), 0  ;;  %p232_p3 = pnand %p1280_p0, %p231_p2 }
   0x6   : > { %p285_p4 = scmp.lt.s32.totalorder (!%p232_p3), %s1431_s15, 1 }
   0x7   : > { %235 = sbr.rel (%p232_p3) target bundleno = 800 (0x320), region = 36 }
   0xc   : > { %vm336_vm0 = vcmask 64512   ;;  %v1441_v0 = vmov 0.0   ;;  %s1639_s15 = smov (!%p285_p4, %s1431_s15), 1  ;;  %vm1442_vm1 = vmmov 0   ;;  %v1443_v9 = vmov 0  }
   0xd   : > { %1323 = vmatprep.subr.mxu0 %v1441_v0  ;;  %337 = vst.msk [vmem:[#allocation4] sm:$0xff] %vm336_vm0, %v1441_v0  ;;  %338 = vst.msk [vmem:[#allocation4 + $0x8] sm:$0xff] %vm336_vm0, %v1441_v0  ;;  %1328 = vmatprep.subr.mxu1 %v1441_v0  ;;  %s1505_s19 = sshll.u32 %s1639_s15, 5  ;;  %vm327_vm2 = vcmask 7168   ;;  %v1444_v10 = vmov -inf   ;;  %s314_s28 = scalar_lea.vmem %s1632_s3, %s1639_s15  ;;  %v665_v11 = vlaneseq }
   0xe   : > { %339 = vst.msk [vmem:[#allocation4 + $0x10] sm:$0xff] %vm336_vm0, %v1441_v0  ;;  %340 = vst.msk [vmem:[#allocation4 + $0x18] sm:$0xff] %vm336_vm0, %v1441_v0  ;;  %1325 = vmatprep.mubr.msk.f32.mxu0 %vm1442_vm1, %v1441_v0  ;;  %1330 = vmatprep.mubr.msk.f32.mxu1 %vm1442_vm1, %v1441_v0  ;;  %s300_s22 = scalar_lea.vmem %s1630_s1, %s1505_s19  ;;  %s292_s25 = scalar_lea.vmem %s1629_s0, %s1505_s19  ;;  %v353_v12 = vld [vmem:[%s314_s28] sm:$0x1] }
   0xf   : > { %v345_v1 = vld [vmem:[%s300_s22] sm:$0xff]  ;;  %v346_v2 = vld [vmem:[%s300_s22 + $0x8] sm:$0xff]  ;;  %v347_v5 = vld [vmem:[%s300_s22 + $0x10] sm:$0xff]  ;;  %1391 = vset.pattern.permute.xlu0 %v1443_v9  ;;  %1392 = vset.pattern.permute.xlu1 %v1443_v9  ;;  %328 = vst.msk [vmem:[#allocation2] sm:$0xff] %vm327_vm2, %v1444_v10  ;;  %v666_v13 = vshrl.u32 %v665_v11, 7  ;;  %vm663_vm3 = vcmp.gt.f32.partialorder %v353_v12, 0.5  ;;  %s1584_s5 = scalar_lea.vmem %s1631_s2, %s1505_s19  ;;  %s322_s8 = scalar_lea.vmem %s1633_s4, %s1505_s19 }
  0x10   : > { %1324 = vmatpush3.xpose.msk.msra.mxu0 %vm336_vm0, %v345_v1  ;;  %1329 = vmatpush3.xpose.msk.msra.mxu1 %vm336_vm0, %v346_v2  ;;  %v341_v3 = vld [vmem:[%s292_s25] sm:$0xff]  ;;  %v342_v4 = vld [vmem:[%s292_s25 + $0x8] sm:$0xff]  ;;  %v348_v6 = vld [vmem:[%s300_s22 + $0x18] sm:$0xff]  ;;  %329 = vst.msk [vmem:[#allocation2 + $0x8] sm:$0xff] %vm327_vm2, %v1444_v10  ;;  %v664_v15 = vsel %vm663_vm3, 1, %v1443_v9 }
  0x11   : > { %1333 = vmatprep.subr.mxu0 %v1441_v0  ;;  %1338 = vmatprep.subr.mxu1 %v1441_v0  ;;  %v343_v7 = vld [vmem:[%s292_s25 + $0x10] sm:$0xff]  ;;  %v344_v8 = vld [vmem:[%s292_s25 + $0x18] sm:$0xff]  ;;  %330 = vst.msk [vmem:[#allocation2 + $0x10] sm:$0xff] %vm327_vm2, %v1444_v10  ;;  %331 = vst.msk [vmem:[#allocation2 + $0x18] sm:$0xff] %vm327_vm2, %v1444_v10  ;;  %v667_v14 = vsub.s32 0, %v666_v13 }
  0x12   : > { %332 = vst.msk [vmem:[#allocation3] sm:$0xff] %vm327_vm2, %v1441_v0  ;;  %333 = vst.msk [vmem:[#allocation3 + $0x8] sm:$0xff] %vm327_vm2, %v1441_v0  ;;  %v349_v53 = vld [vmem:[%s1584_s5] sm:$0xff]  ;;  %v350_v54 = vld [vmem:[%s1584_s5 + $0x8] sm:$0xff] }
  0x13   : > { %1326 = vmatmul.mubr.msk.f32.vlgmr.msra.gmra.mxu0 %vm336_vm0, %v341_v3  ;;  %1331 = vmatmul.mubr.msk.f32.vlgmr.msra.gmra.mxu1 %vm336_vm0, %v342_v4  ;;  %334 = vst.msk [vmem:[#allocation3 + $0x10] sm:$0xff] %vm327_vm2, %v1441_v0  ;;  %335 = vst.msk [vmem:[#allocation3 + $0x18] sm:$0xff] %vm327_vm2, %v1441_v0  ;;  %v668_v16 = vrot.slane %v664_v15, %v667_v14  ;;  %v351_v4 = vld [vmem:[%s1584_s5 + $0x10] sm:$0xff] }
  0x14   : > { %1334 = vmatpush3.xpose.msk.msra.mxu0 %vm336_vm0, %v347_v5  ;;  %1335 = vmatprep.mubr.msk.f32.mxu0 %vm1442_vm1, %v1441_v0 }
  0x15   : > { %1339 = vmatpush3.xpose.msk.msra.mxu1 %vm336_vm0, %v348_v6  ;;  %1340 = vmatprep.mubr.msk.f32.mxu1 %vm1442_vm1, %v1441_v0  ;;  %vm669_vm4 = vcmp.eq.s32.totalorder %v668_v16, 1 }
  0x16   : > { %1343 = vmatprep.subr.mxu0 %v1441_v0  ;;  %1348 = vmatprep.subr.mxu1 %v1441_v0  ;;  %v1559_v37 = vld [vmem:[#allocation2] sm:$0xff] }
  0x17   : > { %1336 = vmatmul.mubr.msk.f32.vlgmr.msra.gmra.mxu0 %vm336_vm0, %v343_v7  ;;  %v675_v40 = vld [vmem:[#allocation2 + $0x8] sm:$0xff]  ;;  %v352_v7 = vld [vmem:[%s1584_s5 + $0x18] sm:$0xff] }
  0x18   : > { %1341 = vmatmul.mubr.msk.f32.vlgmr.msra.gmra.mxu1 %vm336_vm0, %v344_v8  ;;  %1345 = vmatprep.mubr.msk.f32.mxu0 %vm1442_vm1, %v1441_v0  ;;  %v1564_v41 = vld [vmem:[#allocation2 + $0x10] sm:$0xff]  ;;  %v1572_v47 = vld [vmem:[#allocation2 + $0x18] sm:$0xff] }
  0x19   : > { %1350 = vmatprep.mubr.msk.f32.mxu1 %vm1442_vm1, %v1441_v0  ;;  %1344 = vmatpush3.msra.mxu0 %v349_v53 }
  0x1a   : > { %1353 = vmatprep.subr.mxu0 %v1441_v0  ;;  %1349 = vmatpush3.msra.mxu1 %v350_v54 }
  0x1b   : > { %1358 = vmatprep.subr.mxu1 %v1441_v0 }
  0xd3   : > { %v427_v17 = vpop.f32.mrf.mxu0  ;;  %v503_v18 = vpop.f32.mrf.mxu1 }
  0xd4   : > { %v659_v19 = vmul.f32 0.35355338, %v427_v17  ;;  %v660_v20 = vmul.f32 0.35355338, %v503_v18 }
  0xd5   : > { %v1327_v21 = vpop.f32.mrf.mxu0  ;;  %v1332_v22 = vpop.f32.mrf.mxu1 }
  0xd6   : > { %v670_v23 = vsel %vm669_vm4, %v659_v19, -1e+09  ;;  %v671_v24 = vsel %vm669_vm4, %v660_v20, -1e+09  ;;  %v738_v21 = vld [vmem:[#allocation3] sm:$0xff] }
  0xd7   : > { %v678_v25 = vsel %vm336_vm0, %v670_v23, -inf  ;;  %v579_v26 = vpop.f32.mrf.mxu0  ;;  %v681_v30 = vsel %vm336_vm0, %v671_v24, -inf }
  0xd8   : > { %679 = vmax.xlane.f32.xlu0 %v678_v25  ;;  %v661_v27 = vmul.f32 0.35355338, %v579_v26  ;;  %v655_v28 = vpop.f32.mrf.mxu1 }
  0xd9   : > { %v1337_v29 = vpop.f32.mrf.mxu0  ;;  %v662_v31 = vmul.f32 0.35355338, %v655_v28  ;;  %v740_v28 = vld [vmem:[#allocation3 + $0x10] sm:$0xff] }
  0xda   : > { %v1342_v32 = vpop.f32.mrf.mxu1  ;;  %v672_v33 = vsel %vm669_vm4, %v661_v27, -1e+09 }
  0xdb   : > { %v684_v34 = vsel %vm336_vm0, %v672_v33, -inf  ;;  %v673_v35 = vsel %vm669_vm4, %v662_v31, -1e+09  ;;  %v741_v32 = vld [vmem:[#allocation3 + $0x18] sm:$0xff] }
  0xdc   : > { %682 = vmax.xlane.f32.xlu0 %v681_v30  ;;  %685 = vmax.xlane.f32.xlu1 %v684_v34  ;;  %v687_v36 = vsel %vm336_vm0, %v673_v35, -inf }
  0xe0   : > { %688 = vmax.xlane.f32.xlu1 %v687_v36 }
 0x161   : > { %v680_v38 = vpop.xlane.xlu0 %679 }
 0x162   : > { %v1562_v39 = vmax.f32 %v1559_v37, %v680_v38 }
 0x164   : > { %v694_v42 = vsub.f32 %v1559_v37, %v1562_v39  ;;  %1095 = vst.msk [vmem:[#allocation2] sm:$0xff] %vm327_vm2, %v1562_v39  ;;  %708 = vperm.xlu0 %1391, %v1562_v39  }
 0x165   : > { %v683_v43 = vpop.xlane.xlu0 %682  ;;  %v686_v44 = vpop.xlane.xlu1 %685 }
 0x166   : > { %v691_v45 = vmax.f32 %v675_v40, %v683_v43  ;;  %v692_v46 = vmax.f32 %v1564_v41, %v686_v44  ;;  %v698_v14 = vmul.f32 1.442695, %v694_v42 }
 0x168   : > { %v695_v48 = vsub.f32 %v675_v40, %v691_v45  ;;  %1096 = vst.msk [vmem:[#allocation2 + $0x8] sm:$0xff] %vm327_vm2, %v691_v45  ;;  %713 = vperm.xlu1 %1392, %v691_v45   ;;  %v696_v49 = vsub.f32 %v1564_v41, %v692_v46  ;;  %1097 = vst.msk [vmem:[#allocation2 + $0x10] sm:$0xff] %vm327_vm2, %v692_v46  ;;  %v767_v45 = vld [vmem:[#allocation4] sm:$0xff] }
 0x169   : > { %v689_v50 = vpop.xlane.xlu1 %688 }
 0x16a   : > { %v693_v51 = vmax.f32 %v1572_v47, %v689_v50  ;;  %v700_v12 = vmul.f32 1.442695, %v695_v48  ;;  %v702_v16 = vmul.f32 1.442695, %v696_v49  ;;  %v768_v48 = vld [vmem:[#allocation4 + $0x8] sm:$0xff] }
 0x16c   : > { %718 = vperm.xlu1 %1392, %v692_v46   ;;  %v697_v52 = vsub.f32 %v1572_v47, %v693_v51  ;;  %1098 = vst.msk [vmem:[#allocation2 + $0x18] sm:$0xff] %vm327_vm2, %v693_v51 }
 0x16e   : > { %v704_v17 = vmul.f32 1.442695, %v697_v52 }
 0x170   : > { %723 = vperm.xlu1 %1392, %v693_v51  }
 0x1df   : > { %v709_v55 = vpop.permute.xlu0 %708 }
 0x1e0   : > { %v726_v56 = vsub.f32 %v670_v23, %v709_v55  ;;  %v769_v55 = vld [vmem:[#allocation4 + $0x10] sm:$0xff] }
 0x1e2   : > { %v730_v57 = vmul.f32 1.442695, %v726_v56 }
 0x1e3   : > { %v714_v58 = vpop.permute.xlu1 %713 }
 0x1e4   : > { %1393 = vpow2.f32 %v730_v57  ;;  %v727_v59 = vsub.f32 %v671_v24, %v714_v58  ;;  %v739_v24 = vld [vmem:[#allocation3 + $0x8] sm:$0xff] }
 0x1e6   : > { %v732_v60 = vmul.f32 1.442695, %v727_v59 }
 0x1e7   : > { %v719_v61 = vpop.permute.xlu1 %718 }
 0x1e8   : > { %1395 = vpow2.f32 %v732_v60  ;;  %v728_v62 = vsub.f32 %v672_v33, %v719_v61  ;;  %v770_v60 = vld [vmem:[#allocation4 + $0x18] sm:$0xff] }
 0x1ea   : > { %v734_v63 = vmul.f32 1.442695, %v728_v62 }
 0x1eb   : > { %v724_v1 = vpop.permute.xlu1 %723 }
 0x1ec   : > { %1397 = vpow2.f32 %v734_v63  ;;  %v729_v2 = vsub.f32 %v673_v35, %v724_v1 }
 0x1ee   : > { %v736_v3 = vmul.f32 1.442695, %v729_v2 }
 0x1f0   : > { %1399 = vpow2.f32 %v736_v3 }
 0x1f1   : > { %v1394_v5 = vpop.eup %1393  ;;  %1401 = vpow2.f32 %v700_v12 }
 0x1f2   : > { %1346 = vmatmul.mubr.msk.f32.vlgmr.msra.gmra.mxu0 %vm336_vm0, %v1394_v5  ;;  %v746_v6 = vsel %vm336_vm0, %v1394_v5, 0.0  ;;  %1403 = vpow2.f32 %v698_v14 }
 0x1f3   : > { %747 = vadd.xlane.f32.xlu1 %v746_v6  ;;  %1354 = vmatpush3.msra.mxu0 %v351_v4  ;;  %1405 = vpow2.f32 %v702_v16 }
 0x1f4   : > { %1355 = vmatprep.mubr.msk.f32.mxu0 %vm1442_vm1, %v1441_v0  ;;  %1407 = vpow2.f32 %v704_v17 }
 0x1f5   : > { %v1396_v8 = vpop.eup %1395 }
 0x1f6   : > { %1351 = vmatmul.mubr.msk.f32.vlgmr.msra.gmra.mxu1 %vm336_vm0, %v1396_v8  ;;  %v749_v9 = vsel %vm336_vm0, %v1396_v8, 0.0 }
 0x1f7   : > { %750 = vadd.xlane.f32.xlu0 %v749_v9  ;;  %1359 = vmatpush3.msra.mxu1 %v352_v7 }
 0x1f8   : > { %1360 = vmatprep.mubr.msk.f32.mxu1 %vm1442_vm1, %v1441_v0 }
 0x1f9   : > { %v1398_v10 = vpop.eup %1397 }
 0x1fa   : > { %1356 = vmatmul.mubr.msk.f32.vlgmr.msra.gmra.mxu0 %vm336_vm0, %v1398_v10  ;;  %v752_v11 = vsel %vm336_vm0, %v1398_v10, 0.0 }
 0x1fb   : > { %753 = vadd.xlane.f32.xlu1 %v752_v11 }
 0x1fd   : > { %v1400_v13 = vpop.eup %1399 }
 0x1fe   : > { %1361 = vmatmul.mubr.msk.f32.vlgmr.msra.gmra.mxu1 %vm336_vm0, %v1400_v13  ;;  %v755_v15 = vsel %vm336_vm0, %v1400_v13, 0.0  ;;  %v1402_v0 = vpop.eup %1401 }
 0x1ff   : > { %756 = vadd.xlane.f32.xlu1 %v755_v15  ;;  %v1404_v18 = vpop.eup %1403  ;;  %v743_v26 = vmul.f32 %v1402_v0, %v739_v24 }
 0x200   : > { %v1406_v19 = vpop.eup %1405  ;;  %v742_v22 = vmul.f32 %v1404_v18, %v738_v21 }
 0x201   : > { %v1408_v20 = vpop.eup %1407  ;;  %v744_v30 = vmul.f32 %v1406_v19, %v740_v28 }
 0x202   : > { %v745_v35 = vmul.f32 %v1408_v20, %v741_v32 }
 0x20d   : > { %778 = vperm.xlu0 %1391, %v1402_v0  }
 0x210   : > { %773 = vperm.xlu1 %1392, %v1404_v18  }
 0x214   : > { %783 = vperm.xlu1 %1392, %v1406_v19  }
 0x218   : > { %788 = vperm.xlu1 %1392, %v1408_v20  }
 0x27c   : > { %v748_v23 = vpop.xlane.xlu1 %747 }
 0x27d   : > { %v758_v25 = vadd.f32 %v748_v23, %v742_v22 }
 0x27f   : > { %763 = vst.msk [vmem:[#allocation3] sm:$0xff] %vm327_vm2, %v758_v25 }
 0x280   : > { %v751_v27 = vpop.xlane.xlu0 %750 }
 0x281   : > { %v759_v29 = vadd.f32 %v751_v27, %v743_v26 }
 0x283   : > { %764 = vst.msk [vmem:[#allocation3 + $0x8] sm:$0xff] %vm327_vm2, %v759_v29 }
 0x284   : > { %v754_v31 = vpop.xlane.xlu1 %753 }
 0x285   : > { %v760_v33 = vadd.f32 %v754_v31, %v744_v30 }
 0x286   : > { %v1106_v34 = vld [vmem:[#allocation3] sm:$0xff] }
 0x287   : > { %765 = vst.msk [vmem:[#allocation3 + $0x10] sm:$0xff] %vm327_vm2, %v760_v33  ;;  %1409 = vrcp.f32 %v1106_v34 }
 0x288   : > { %v757_v36 = vpop.xlane.xlu1 %756  ;;  %v779_v49 = vpop.permute.xlu0 %778 }
 0x289   : > { %v761_v37 = vadd.f32 %v757_v36, %v745_v35  ;;  %v792_v54 = vmul.f32 %v779_v49, %v768_v48 }
 0x28a   : > { %v1107_v38 = vld [vmem:[#allocation3 + $0x8] sm:$0xff] }
 0x28b   : > { %766 = vst.msk [vmem:[#allocation3 + $0x18] sm:$0xff] %vm327_vm2, %v761_v37  ;;  %1411 = vrcp.f32 %v1107_v38 }
 0x28c   : > { %v774_v46 = vpop.permute.xlu1 %773 }
 0x28d   : > { %v791_v47 = vmul.f32 %v774_v46, %v767_v45 }
 0x28e   : > { %v1108_v39 = vld [vmem:[#allocation3 + $0x10] sm:$0xff] }
 0x28f   : > { %1413 = vrcp.f32 %v1108_v39 }
 0x290   : > { %v784_v52 = vpop.permute.xlu1 %783 }
 0x291   : > { %v793_v59 = vmul.f32 %v784_v52, %v769_v55 }
 0x292   : > { %v1109_v40 = vld [vmem:[#allocation3 + $0x18] sm:$0xff] }
 0x293   : > { %1415 = vrcp.f32 %v1109_v40 }
 0x294   : > { %v1410_v41 = vpop.eup %1409  ;;  %v789_v61 = vpop.permute.xlu1 %788 }
 0x295   : > { %1116 = vperm.xlu1 %1392, %v1410_v41   ;;  %v794_v2 = vmul.f32 %v789_v61, %v770_v60 }
 0x298   : > { %v1412_v42 = vpop.eup %1411 }
 0x299   : > { %1121 = vperm.xlu0 %1391, %v1412_v42  }
 0x29c   : > { %v1414_v43 = vpop.eup %1413 }
 0x29d   : > { %1126 = vperm.xlu1 %1392, %v1414_v43  }
 0x2a0   : > { %v1416_v44 = vpop.eup %1415 }
 0x2a1   : > { %1131 = vperm.xlu0 %1391, %v1416_v44  }
 0x2b2   : > { %v864_v50 = vpop.f32.mrf.mxu0 }
 0x2b3   : > { %v1087_v51 = vadd.f32 %v864_v50, %v791_v47 }
 0x2b4   : > { %v1347_v53 = vpop.f32.mrf.mxu0 }
 0x2b5   : > { %1091 = vst.msk [vmem:[#allocation4] sm:$0xff] %vm336_vm0, %v1087_v51 }
 0x2b6   : > { %v937_v56 = vpop.f32.mrf.mxu1 }
 0x2b7   : > { %v1088_v57 = vadd.f32 %v937_v56, %v792_v54 }
 0x2b8   : > { %v1352_v58 = vpop.f32.mrf.mxu1 }
 0x2b9   : > { %1092 = vst.msk [vmem:[#allocation4 + $0x8] sm:$0xff] %vm336_vm0, %v1088_v57 }
 0x2ba   : > { %v1010_v62 = vpop.f32.mrf.mxu0 }
 0x2bb   : > { %v1089_v63 = vadd.f32 %v1010_v62, %v793_v59 }
 0x2bc   : > { %v1357_v1 = vpop.f32.mrf.mxu0  ;;  %v1102_v7 = vld [vmem:[#allocation4] sm:$0xff] }
 0x2bd   : > { %1093 = vst.msk [vmem:[#allocation4 + $0x10] sm:$0xff] %vm336_vm0, %v1089_v63 }
 0x2be   : > { %v1083_v3 = vpop.f32.mrf.mxu1 }
 0x2bf   : > { %v1090_v4 = vadd.f32 %v1083_v3, %v794_v2 }
 0x2c0   : > { %v1362_v5 = vpop.f32.mrf.mxu1  ;;  %v1103_v9 = vld [vmem:[#allocation4 + $0x8] sm:$0xff] }
 0x2c1   : > { %1094 = vst.msk [vmem:[#allocation4 + $0x18] sm:$0xff] %vm336_vm0, %v1090_v4 }
 0x2c4   : > { %v1104_v13 = vld [vmem:[#allocation4 + $0x10] sm:$0xff] }
 0x2c8   : > { %v1105_v16 = vld [vmem:[#allocation4 + $0x18] sm:$0xff] }
 0x310   : > { %v1117_v6 = vpop.permute.xlu1 %1116 }
 0x311   : > { %v1134_v8 = vmul.f32 %v1117_v6, %v1102_v7 }
 0x313   : > { %1138 = vst.msk [vmem:[%s322_s8] sm:$0xff] %vm336_vm0, %v1134_v8 }
 0x314   : > { %v1122_v10 = vpop.permute.xlu0 %1121 }
 0x315   : > { %v1135_v11 = vmul.f32 %v1122_v10, %v1103_v9 }
 0x317   : > { %1139 = vst.msk [vmem:[%s322_s8 + $0x8] sm:$0xff] %vm336_vm0, %v1135_v11 }
 0x318   : > { %v1127_v12 = vpop.permute.xlu1 %1126 }
 0x319   : > { %v1136_v14 = vmul.f32 %v1127_v12, %v1104_v13 }
 0x31b   : > { %1140 = vst.msk [vmem:[%s322_s8 + $0x10] sm:$0xff] %vm336_vm0, %v1136_v14 }
 0x31c   : > { %v1132_v15 = vpop.permute.xlu0 %1131 }
 0x31d   : > { %v1137_v17 = vmul.f32 %v1132_v15, %v1105_v16 }
 0x31f   : > { %1141 = vst.msk [vmem:[%s322_s8 + $0x18] sm:$0xff] %vm336_vm0, %v1137_v17 }
 0x320 PF: > { %s14_s17 = sadd.s32 1, %s1439_s17   ;;  %s1634_s15 = smov %s1435_s16 }
 0x321   : > { %p11_p5 = scmp.ge.s32.totalorder %s14_s17, 4   ;;  %s1635_s16 = smov %s1637_s18 }
 0x323   :  { %13 = sbr.rel (!%p11_p5) target bundleno = 2 (0x2), region = 83 }

// kernel: transformer_forward.39
= control target key start
LH: loop header
LB: loop body
LE: loop exit
PB: predicated region body
PF: predicated region fallthrough
CT: control target
= control target key end

     0   :  { %s498_s1 = inlined_call_operand.vmem [shape: f32[128,128], index: 1, kind: input, shape index: {}]   ;;  %s499_s0 = inlined_call_operand.vmem [shape: f32[16,128], index: 0, kind: input, shape index: {}]   ;;  %s500_s3 = inlined_call_operand.vmem [shape: f32[128,128], index: 3, kind: input, shape index: {}]   ;;  %s501_s2 = inlined_call_operand.vmem [shape: f32[1,128], index: 2, kind: input, shape index: {}]   ;;  %s502_s4 = inlined_call_operand.vmem [shape: f32[1,128], index: 4, kind: input, shape index: {}]   ;;  %s503_s5 = inlined_call_operand.vmem [shape: f32[16,128], index: 5, kind: output, shape index: {}]  }
   0x1   :  { %v43_v0 = vld [vmem:[%s498_s1 + $0x78] sm:$0xff]  ;;  %v42_v1 = vld [vmem:[%s498_s1 + $0x70] sm:$0xff]  ;;  %v41_v2 = vld [vmem:[%s498_s1 + $0x68] sm:$0xff] }
   0x2   :  { %283 = vmatprep.subr.mxu0 %v43_v0  ;;  %v40_v3 = vld [vmem:[%s498_s1 + $0x60] sm:$0xff]  ;;  %v39_v5 = vld [vmem:[%s498_s1 + $0x58] sm:$0xff]  ;;  %v144_v7 = vld [vmem:[%s500_s3 + $0x70] sm:$0xff] }
   0x3   :  { %284 = vmatpush3.msra.mxu0 %v43_v0  ;;  %v26_v4 = vld [vmem:[%s499_s0] sm:$0xff]  ;;  %v145_v6 = vld [vmem:[%s500_s3 + $0x78] sm:$0xff]  ;;  %v38_v8 = vld [vmem:[%s498_s1 + $0x50] sm:$0xff] }
   0x4   :  { %285 = vmatprep.subr.mxu0 %v42_v1  ;;  %315 = vmatprep.mubr.f32.mxu0 %v26_v4  ;;  %v143_v9 = vld [vmem:[%s500_s3 + $0x68] sm:$0xff]  ;;  %v142_v11 = vld [vmem:[%s500_s3 + $0x60] sm:$0xff]  ;;  %v141_v13 = vld [vmem:[%s500_s3 + $0x58] sm:$0xff] }
   0x5   :  { %286 = vmatpush3.msra.mxu0 %v42_v1  ;;  %318 = vmatprep.subr.mxu1 %v145_v6  ;;  %v37_v10 = vld [vmem:[%s498_s1 + $0x48] sm:$0xff]  ;;  %v36_v12 = vld [vmem:[%s498_s1 + $0x40] sm:$0xff]  ;;  %v35_v14 = vld [vmem:[%s498_s1 + $0x38] sm:$0xff] }
   0x6   :  { %287 = vmatprep.subr.mxu0 %v41_v2  ;;  %319 = vmatpush3.msra.mxu1 %v145_v6  ;;  %v140_v15 = vld [vmem:[%s500_s3 + $0x50] sm:$0xff]  ;;  %v139_v17 = vld [vmem:[%s500_s3 + $0x48] sm:$0xff]  ;;  %v138_v19 = vld [vmem:[%s500_s3 + $0x40] sm:$0xff] }
   0x7   :  { %288 = vmatpush3.msra.mxu0 %v41_v2  ;;  %320 = vmatprep.subr.mxu1 %v144_v7  ;;  %v34_v16 = vld [vmem:[%s498_s1 + $0x30] sm:$0xff]  ;;  %v33_v18 = vld [vmem:[%s498_s1 + $0x28] sm:$0xff]  ;;  %v32_v20 = vld [vmem:[%s498_s1 + $0x20] sm:$0xff] }
   0x8   :  { %289 = vmatprep.subr.mxu0 %v40_v3  ;;  %321 = vmatpush3.msra.mxu1 %v144_v7  ;;  %v137_v21 = vld [vmem:[%s500_s3 + $0x38] sm:$0xff]  ;;  %v136_v23 = vld [vmem:[%s500_s3 + $0x30] sm:$0xff]  ;;  %v135_v25 = vld [vmem:[%s500_s3 + $0x28] sm:$0xff] }
   0x9   :  { %290 = vmatpush3.msra.mxu0 %v40_v3  ;;  %322 = vmatprep.subr.mxu1 %v143_v9  ;;  %v31_v22 = vld [vmem:[%s498_s1 + $0x18] sm:$0xff]  ;;  %v30_v24 = vld [vmem:[%s498_s1 + $0x10] sm:$0xff]  ;;  %v29_v26 = vld [vmem:[%s498_s1 + $0x8] sm:$0xff] }
   0xa   :  { %291 = vmatprep.subr.mxu0 %v39_v5  ;;  %323 = vmatpush3.msra.mxu1 %v143_v9  ;;  %v134_v27 = vld [vmem:[%s500_s3 + $0x20] sm:$0xff]  ;;  %v27_v29 = vld [vmem:[%s499_s0 + $0x8] sm:$0xff]  ;;  %v133_v30 = vld [vmem:[%s500_s3 + $0x18] sm:$0xff] }
   0xb   :  { %292 = vmatpush3.msra.mxu0 %v39_v5  ;;  %324 = vmatprep.subr.mxu1 %v142_v11  ;;  %v28_v28 = vld [vmem:[%s498_s1] sm:$0xff]  ;;  %v132_v31 = vld [vmem:[%s500_s3 + $0x10] sm:$0xff]  ;;  %v131_v32 = vld [vmem:[%s500_s3 + $0x8] sm:$0xff] }
   0xc   :  { %293 = vmatprep.subr.mxu0 %v38_v8  ;;  %325 = vmatpush3.msra.mxu1 %v142_v11  ;;  %v130_v33 = vld [vmem:[%s500_s3] sm:$0xff] }
   0xd   :  { %294 = vmatpush3.msra.mxu0 %v38_v8  ;;  %326 = vmatprep.subr.mxu1 %v141_v13  ;;  %v245_v34 = vld [vmem:[%s501_s2] ss:$0 sm:$0xff] }
   0xe   :  { %295 = vmatprep.subr.mxu0 %v37_v10  ;;  %327 = vmatpush3.msra.mxu1 %v141_v13  ;;  %v246_v42 = vld [vmem:[%s502_s4] ss:$0 sm:$0xff] }
   0xf   :  { %296 = vmatpush3.msra.mxu0 %v37_v10  ;;  %328 = vmatprep.subr.mxu1 %v140_v15 }
  0x10   :  { %297 = vmatprep.subr.mxu0 %v36_v12  ;;  %329 = vmatpush3.msra.mxu1 %v140_v15 }
  0x11   :  { %298 = vmatpush3.msra.mxu0 %v36_v12  ;;  %330 = vmatprep.subr.mxu1 %v139_v17 }
  0x12   :  { %299 = vmatprep.subr.mxu0 %v35_v14  ;;  %331 = vmatpush3.msra.mxu1 %v139_v17 }
  0x13   :  { %300 = vmatpush3.msra.mxu0 %v35_v14  ;;  %332 = vmatprep.subr.mxu1 %v138_v19 }
  0x14   :  { %301 = vmatprep.subr.mxu0 %v34_v16  ;;  %333 = vmatpush3.msra.mxu1 %v138_v19 }
  0x15   :  { %302 = vmatpush3.msra.mxu0 %v34_v16  ;;  %334 = vmatprep.subr.mxu1 %v137_v21 }
  0x16   :  { %303 = vmatprep.subr.mxu0 %v33_v18  ;;  %335 = vmatpush3.msra.mxu1 %v137_v21 }
  0x17   :  { %304 = vmatpush3.msra.mxu0 %v33_v18  ;;  %336 = vmatprep.subr.mxu1 %v136_v23 }
  0x18   :  { %305 = vmatprep.subr.mxu0 %v32_v20  ;;  %337 = vmatpush3.msra.mxu1 %v136_v23 }
  0x19   :  { %306 = vmatpush3.msra.mxu0 %v32_v20  ;;  %338 = vmatprep.subr.mxu1 %v135_v25 }
  0x1a   :  { %307 = vmatprep.subr.mxu0 %v31_v22  ;;  %339 = vmatpush3.msra.mxu1 %v135_v25 }
  0x1b   :  { %308 = vmatpush3.msra.mxu0 %v31_v22  ;;  %340 = vmatprep.subr.mxu1 %v134_v27 }
  0x1c   :  { %309 = vmatprep.subr.mxu0 %v30_v24  ;;  %341 = vmatpush3.msra.mxu1 %v134_v27 }
  0x1d   :  { %310 = vmatpush3.msra.mxu0 %v30_v24  ;;  %342 = vmatprep.subr.mxu1 %v133_v30 }
  0x1e   :  { %311 = vmatprep.subr.mxu0 %v29_v26  ;;  %343 = vmatpush3.msra.mxu1 %v133_v30 }
  0x1f   :  { %312 = vmatpush3.msra.mxu0 %v29_v26  ;;  %344 = vmatprep.subr.mxu1 %v132_v31 }
  0x20   :  { %313 = vmatprep.subr.mxu0 %v28_v28  ;;  %345 = vmatpush3.msra.mxu1 %v132_v31 }
  0x21   :  { %314 = vmatpush3.msra.mxu0 %v28_v28  ;;  %346 = vmatprep.subr.mxu1 %v131_v32 }
  0x22   :  { %316 = vmatmul.mubr.f32.vlgmr.msra.gmra.mxu0 %v27_v29  ;;  %347 = vmatpush3.msra.mxu1 %v131_v32 }
  0x23   :  { %348 = vmatprep.subr.mxu1 %v130_v33 }
  0x24   :  { %349 = vmatpush3.msra.mxu1 %v130_v33 }
  0xe2   :  { %v317_v35 = vpop.f32.mrf.mxu0 }
  0xe3   :  { %v123_v36 = vadd.f32 %v317_v35, %v245_v34 }
  0xe4   :  { %v117_v37 = vpop.f32.mrf.mxu0 }
  0xe5   :  { %v118_v38 = vadd.f32 %v245_v34, %v117_v37  ;;  %v127_v40 = vmax.f32 %v123_v36, 0.0 }
  0xe7   :  { %v126_v39 = vmax.f32 %v118_v38, 0.0 }
  0xe9   :  { %350 = vmatprep.mubr.f32.mxu1 %v126_v39 }
  0xea   :  { %351 = vmatmul.mubr.f32.vlgmr.msra.gmra.mxu1 %v127_v40 }
 0x1aa   :  { %v352_v41 = vpop.f32.mrf.mxu1 }
 0x1ab   :  { %v238_v44 = vadd.f32 %v352_v41, %v246_v42 }
 0x1ac   :  { %v212_v43 = vpop.f32.mrf.mxu1 }
 0x1ad   :  { %240 = vst [vmem:[%s503_s5 + $0x8] sm:$0xff] %v238_v44  ;;  %v237_v45 = vadd.f32 %v246_v42, %v212_v43 }
 0x1af   :  { %239 = vst [vmem:[%s503_s5] sm:$0xff] %v237_v45 }

</bundles_post_ra>
